<compile_context>
chip_gen: v7x
topology: tpu7x:2x2x1
jax: 0.10.0
libtpu: 0.0.40
codegen_flags: <defaults>
</compile_context>

<pallas_src>
import jax
import jax.numpy as jnp
from jax import lax
from jax.experimental import pallas as pl
from jax.experimental.pallas import tpu as pltpu


# ----------------------------------------------------------------------------
# Pallas kernel: per-pair similarity + top-2 row/col stats + dustbin-padded
# log-softmax sum, Bt pairs per grid step.
# ----------------------------------------------------------------------------
def _mnn_kernel(d0_ref, d1_ref, sim_ref, la_ref, rstat_ref, cstat_ref):
    Bt, N, _ = d0_ref.shape
    M = d1_ref.shape[1]
    neg_inf = jnp.float32(-jnp.inf)

    # Batch-invariant iotas hoisted out of the per-pair loop (JAX does not CSE broadcasts).
    rids_nm = lax.broadcasted_iota(jnp.int32, (N, M), 0)
    rids_mn = rids_nm if N == M else lax.broadcasted_iota(jnp.int32, (M, N), 0)
    r8n = lax.broadcasted_iota(jnp.int32, (8, N), 0)
    r8m = r8n if N == M else lax.broadcasted_iota(jnp.int32, (8, M), 0)

    # Zero the whole dustbin-padded block once; the inner (N, M) region is overwritten below.
    la_ref[...] = jnp.zeros(la_ref.shape, la_ref.dtype)

    for i in range(Bt):   # static unroll over the sub-batch (Bt is small)
        d0 = d0_ref[i]    # (N, C) f32
        d1 = d1_ref[i]    # (M, C) f32

        # similarity (N, M) and its transpose (M, N), both on the MXU, f32 accumulation
        sim = lax.dot_general(d0, d1, (((1,), (1,)), ((), ())),
                              preferred_element_type=jnp.float32)
        sim_t = lax.dot_general(d1, d0, (((1,), (1,)), ((), ())),
                                preferred_element_type=jnp.float32)
        sim_ref[i] = sim

        # ---- matches 1 -> 0: per-column of sim, axis-0 reductions -> lane-dense (1, M)
        best1 = jnp.max(sim, axis=0, keepdims=True)
        idx1 = jnp.min(jnp.where(sim == best1, rids_nm, N), axis=0, keepdims=True)
        second1 = jnp.max(jnp.where(rids_nm == idx1, neg_inf, sim),
                          axis=0, keepdims=True)

        # ---- matches 0 -> 1: per-column of sim_T (= per-row of sim) -> lane-dense (1, N)
        best0 = jnp.max(sim_t, axis=0, keepdims=True)
        idx0 = jnp.min(jnp.where(sim_t == best0, rids_mn, M), axis=0, keepdims=True)
        second0 = jnp.max(jnp.where(rids_mn == idx0, neg_inf, sim_t),
                          axis=0, keepdims=True)
        # NOTE: first-occurrence argmax (min index among ties) matches torch.topk behavior.

        # ---- packed lane-dense stat slabs: row 0 = argmax (as f32), 1 = best, 2 = second
        rstat_ref[i] = jnp.where(
            r8n == 0, idx0.astype(jnp.float32),
            jnp.where(r8n == 1, best0,
                      jnp.where(r8n == 2, second0, 0.0)))
        cstat_ref[i] = jnp.where(
            r8m == 0, idx1.astype(jnp.float32),
            jnp.where(r8m == 1, best1,
                      jnp.where(r8m == 2, second1, 0.0)))

        # ---- log_softmax(sim, -1) + log_softmax(sim, -2) with per-axis max shifts
        # (numerically safe for arbitrary similarity ranges; best1 is reused as the col max)
        row_max = jnp.max(sim, axis=1, keepdims=True)                              # (N, 1)
        lse_row = row_max + jnp.log(jnp.sum(jnp.exp(sim - row_max),
                                            axis=1, keepdims=True))                # (N, 1)
        lse_col = best1 + jnp.log(jnp.sum(jnp.exp(sim - best1),
                                          axis=0, keepdims=True))                  # (1, M)
        la = (sim - lse_row) + (sim - lse_col)
        la_ref[i, pl.ds(0, N), pl.ds(0, M)] = la


def _pick_block_batch(B, max_bt=4):
    """Largest divisor of B that is <= max_bt while keeping grid length >= 2
    (so both v7x TensorCores get work); falls back to 1."""
    if B <= 1:
        return 1
    best = 1
    for d in range(2, min(B, max_bt) + 1):
        if B % d == 0 and B // d >= 2:
            best = d
    return best


def mnn_pallas(desc0, desc1, *, block_batch=None):
    """desc0: (B, N, C), desc1: (B, M, C).

    Returns (sim (B,N,M), log_assignment (B,N+1,M+1) dustbin-padded,
             row_stats (B,8,N), col_stats (B,8,M))."""
    B, N, C = desc0.shape
    _, M, _ = desc1.shape

    desc0 = desc0.astype(jnp.float32)
    desc1 = desc1.astype(jnp.float32)

    Bt = block_batch if block_batch is not None else _pick_block_batch(B)
    assert B % Bt == 0, "block_batch must divide the batch size"
    grid = (B // Bt,)

    out_shapes = (
        jax.ShapeDtypeStruct((B, N, M), jnp.float32),          # similarity
        jax.ShapeDtypeStruct((B, N + 1, M + 1), jnp.float32),  # log_assignment (dustbin-padded)
        jax.ShapeDtypeStruct((B, 8, N), jnp.float32),          # row stats: [idx0, best0, second0, 0...]
        jax.ShapeDtypeStruct((B, 8, M), jnp.float32),          # col stats: [idx1, best1, second1, 0...]
    )

    in_specs = [pl.BlockSpec((Bt, N, C), lambda b: (b, 0, 0)),
                pl.BlockSpec((Bt, M, C), lambda b: (b, 0, 0))]
    out_specs = (pl.BlockSpec((Bt, N, M), lambda b: (b, 0, 0)),
                 pl.BlockSpec((Bt, N + 1, M + 1), lambda b: (b, 0, 0)),
                 pl.BlockSpec((Bt, 8, N), lambda b: (b, 0, 0)),
                 pl.BlockSpec((Bt, 8, M), lambda b: (b, 0, 0)))

    # Advisory cost estimate so XLA schedules the custom call sensibly vs the glue ops.
    flops = 4 * B * N * M * C                                   # sim + sim_T
    transcendentals = 2 * B * N * M                             # two exp passes
    bytes_accessed = 4 * (B * (N + M) * C
                          + B * N * M + B * (N + 1) * (M + 1)
                          + B * 8 * (N + M))

    # Double-buffered block bytes + rough in-flight intermediates; cap at 64 MiB (v7x VMEM).
    block_bytes = 4 * Bt * ((N + M) * C + N * M + (N + 1) * (M + 1) + 8 * (N + M))
    vmem_limit = int(min(64 * 2 ** 20,
                         max(32 * 2 ** 20, 2 * block_bytes + 8 * N * M * 4)))

    return pl.pallas_call(
        _mnn_kernel,
        out_shape=out_shapes,
        grid=grid,
        in_specs=in_specs,
        out_specs=out_specs,
        compiler_params=pltpu.CompilerParams(
            dimension_semantics=("parallel",),
            vmem_limit_bytes=vmem_limit),
        cost_estimate=pl.CostEstimate(flops=flops,
                                      transcendentals=transcendentals,
                                      bytes_accessed=bytes_accessed),
    )(desc0, desc1)


# ----------------------------------------------------------------------------
# Plain-JAX glue reproducing Matcher.forward (matcher_type='MNN', freeze=False)
# ----------------------------------------------------------------------------
def _pad_sparse_to_length(positions, descriptors, length):
    """pad_mode='zeros' semantics of pad_sparse_*_to_length (pad with zeros / truncate)."""
    n = positions.shape[0]
    if n < length:
        positions = jnp.concatenate(
            [positions, jnp.zeros((length - n, 3), positions.dtype)], axis=0)
        descriptors = jnp.concatenate(
            [descriptors, jnp.zeros((length - n, descriptors.shape[1]), descriptors.dtype)],
            axis=0)
    elif n > length:
        positions = positions[:length]
        descriptors = descriptors[:length]
    return positions, descriptors
    # TODO(synk): pad_mode='random' (random keypoints / scaled random descriptors, the only
    #             place the reference uses desc_scale_factor) is not implemented.


def _find_nn(best, second, idx, ratio_thresh=None, distance_thresh=None):
    """Same logic as find_nn(sim.topk(2)) with cosine -> squared-euclidean conversion."""
    dist1 = 2.0 * (1.0 - best)
    dist2 = 2.0 * (1.0 - second)
    mask = jnp.ones_like(best, dtype=bool)
    if ratio_thresh is not None:
        mask &= dist1 <= (ratio_thresh ** 2) * dist2
    if distance_thresh is not None:
        mask &= dist1 <= distance_thresh ** 2
    return jnp.where(mask, idx, -1)


def _mutual_check(m0, m1):
    inds0 = jnp.arange(m0.shape[-1])[None, :]
    inds1 = jnp.arange(m1.shape[-1])[None, :]
    loop0 = jnp.take_along_axis(m1, jnp.where(m0 > -1, m0, 0), axis=-1)
    loop1 = jnp.take_along_axis(m0, jnp.where(m1 > -1, m1, 0), axis=-1)
    m0n = jnp.where((m0 > -1) & (inds0 == loop0), m0, -1)
    m1n = jnp.where((m1 > -1) & (inds1 == loop1), m1, -1)
    return m0n, m1n


class MatcherMNN:
    """JAX/Pallas re-implementation of Matcher with matcher_type='MNN', pad_mode='zeros'."""

    def __init__(self, max_points_num=128, ratio_thresh=None, distance_thresh=None,
                 mutual_check=True, pad_mode="zeros", desc_scale_factor=1.0):
        assert pad_mode == "zeros"
        self.max_points_num = max_points_num
        self.ratio_thresh = ratio_thresh
        self.distance_thresh = distance_thresh
        self.mutual_check = mutual_check
        # NOTE: in the PyTorch reference desc_scale_factor only scales the *random* padding
        # descriptors (pad_mode='random'); it is never applied to real descriptors or sim,
        # so it is intentionally unused in the 'zeros' path here.
        self.desc_scale_factor = desc_scale_factor

    def _pad_and_stack(self, feats):
        pos_list, desc_list = [], []
        for p, d in zip(feats["sparse_positions"], feats["sparse_descriptors"]):
            p_i, d_i = _pad_sparse_to_length(p, d, self.max_points_num)
            pos_list.append(p_i)
            desc_list.append(d_i)
        feats = dict(feats)
        feats["sparse_positions"] = jnp.stack(pos_list, axis=0)
        feats["sparse_descriptors"] = jnp.stack(desc_list, axis=0)
        return feats

    def __call__(self, feats0, feats1):
        feats0 = self._pad_and_stack(feats0)
        feats1 = self._pad_and_stack(feats1)

        desc0 = feats0["sparse_descriptors"].astype(jnp.float32)   # (B, N, C)
        desc1 = feats1["sparse_descriptors"].astype(jnp.float32)   # (B, M, C)
        kpts0 = feats0["sparse_positions"]                         # (B, N, 3)
        kpts1 = feats1["sparse_positions"]                         # (B, M, 3)

        sim, log_assignment, rstat, cstat = mnn_pallas(desc0, desc1)

        # unpack lane-dense stat slabs (argmax stored as exact small f32 integers)
        nn0_idx = rstat[:, 0, :].astype(jnp.int32)   # (B, N) index into image1
        nn0_s1 = rstat[:, 1, :]
        nn0_s2 = rstat[:, 2, :]
        nn1_idx = cstat[:, 0, :].astype(jnp.int32)   # (B, M) index into image0
        nn1_s1 = cstat[:, 1, :]
        nn1_s2 = cstat[:, 2, :]

        # NOTE: zero-padded keypoints give all-zero sim rows/cols and participate in the
        # softmax / top-2 exactly as in the PyTorch reference (which also pads with zeros
        # before calling the matcher).
        matches0 = _find_nn(nn0_s1, nn0_s2, nn0_idx,
                            self.ratio_thresh, self.distance_thresh)
        matches1 = _find_nn(nn1_s1, nn1_s2, nn1_idx,
                            self.ratio_thresh, self.distance_thresh)
        if self.mutual_check:
            matches0, matches1 = _mutual_check(matches0, matches1)

        matching_scores0 = (matches0 > -1).astype(jnp.float32)
        matching_scores1 = (matches1 > -1).astype(jnp.float32)

        # matched keypoints (zeroed where unmatched)
        matched_kpts0 = jnp.where((matches0 > -1)[..., None], kpts0, 0.0)
        matched_kpts1 = jnp.where((matches1 > -1)[..., None], kpts1, 0.0)

        return {
            "matches0": matches0,
            "matches1": matches1,
            "matching_scores0": matching_scores0,
            "matching_scores1": matching_scores1,
            "matched_kpts0": matched_kpts0,
            "matched_kpts1": matched_kpts1,
            "similarity": sim,
            "log_assignment": log_assignment,   # already dustbin-padded by the kernel
            "input_feats0": feats0,
            "input_feats1": feats1,
        }


# ----------------------------------------------------------------------------
# Demo
# ----------------------------------------------------------------------------
def _make_sparse_feats(key, batch_lengths, desc_dim, image_size):
    pos_list, desc_list = [], []
    for n in batch_lengths:
        key, k1, k2, k3 = jax.random.split(key, 4)
        xy = jax.random.uniform(k1, (n, 2), jnp.float32) * jnp.array(
            image_size, jnp.float32)
        score = jax.random.uniform(k2, (n, 1), jnp.float32)
        pos_list.append(jnp.concatenate([xy, score], axis=1))            # (n, 3)
        d = jax.random.normal(k3, (n, desc_dim), jnp.float32)
        d = d / (jnp.linalg.norm(d, axis=1, keepdims=True) + 1e-12)       # L2-normalized
        desc_list.append(d)
    return {
        "sparse_positions": pos_list,
        "sparse_descriptors": desc_list,
        "image_size": jnp.array(image_size, jnp.float32),
    }, key


if __name__ == "__main__":
    key = jax.random.PRNGKey(0)

    B = 2
    max_points_num = 128
    desc_dim = 64
    image_size = (160.0, 120.0)   # (W, H)

    # per-image variable keypoint counts to exercise padding
    feats0, key = _make_sparse_feats(key, [100, 128], desc_dim, image_size)
    feats1, key = _make_sparse_feats(key, [128, 90], desc_dim, image_size)

    matcher = MatcherMNN(max_points_num=max_points_num,
                         ratio_thresh=None, distance_thresh=None,
                         mutual_check=True, pad_mode="zeros",
                         desc_scale_factor=1.0)

    out = matcher(feats0, feats1)
    jax.block_until_ready(out["similarity"])
    jax.block_until_ready(out["log_assignment"])
    jax.block_until_ready(out["matches0"])

    assert out["similarity"].shape == (B, max_points_num, max_points_num)
    assert out["log_assignment"].shape == (B, max_points_num + 1, max_points_num + 1)
    assert out["matches0"].shape == (B, max_points_num)
    assert out["matched_kpts0"].shape == (B, max_points_num, 3)
    assert bool(jnp.all(out["matches0"] < max_points_num))
    assert bool(jnp.all(jnp.isfinite(out["log_assignment"][:, :-1, :-1])))

    # --- pure-JAX reference checks (generous tolerances to be matmul-precision agnostic) ---
    d0p = out["input_feats0"]["sparse_descriptors"].astype(jnp.float32)
    d1p = out["input_feats1"]["sparse_descriptors"].astype(jnp.float32)
    sim_ref = jnp.einsum("bnc,bmc->bnm", d0p, d1p, precision="highest")
    la_ref = (jax.nn.log_softmax(sim_ref, axis=-1)
              + jax.nn.log_softmax(sim_ref, axis=-2))
    assert bool(jnp.allclose(out["similarity"], sim_ref, atol=2e-2))
    assert bool(jnp.allclose(out["log_assignment"][:, :-1, :-1], la_ref, atol=1e-1))
    assert bool(jnp.all(out["log_assignment"][:, -1, :] == 0.0))
    assert bool(jnp.all(out["log_assignment"][:, :, -1] == 0.0))

    # match indices: compare against argmax + mutual check on the kernel's own similarity
    m0_ref = jnp.argmax(out["similarity"], axis=-1).astype(jnp.int32)
    m1_ref = jnp.argmax(out["similarity"], axis=-2).astype(jnp.int32)
    m0_ref, m1_ref = _mutual_check(m0_ref, m1_ref)
    assert bool(jnp.array_equal(out["matches0"], m0_ref))
    assert bool(jnp.array_equal(out["matches1"], m1_ref))

    print("KERNEL_OK")
</pallas_src>

<mosaic_0001>
module attributes {stable_mosaic.version = 11 : i64} {
  func.func @_mnn_kernel(%arg0: i32, %arg1: memref<1x128x64xf32, #tpu.memory_space<vmem>>, %arg2: memref<1x128x64xf32, #tpu.memory_space<vmem>>, %arg3: memref<1x128x128xf32, #tpu.memory_space<vmem>>, %arg4: memref<1x129x129xf32, #tpu.memory_space<vmem>>, %arg5: memref<1x8x128xf32, #tpu.memory_space<vmem>>, %arg6: memref<1x8x128xf32, #tpu.memory_space<vmem>>) attributes {dimension_semantics = [#tpu.dimension_semantics<parallel>], iteration_bounds = array<i64: 2>, scalar_prefetch = 0 : i64, scratch_operands = 0 : i64, tpu.core_type = #tpu.core_type<tc>, window_params = [{transform_indices = @transform_0, window_bounds = array<i64: 1, 128, 64>}, {transform_indices = @transform_1, window_bounds = array<i64: 1, 128, 64>}, {transform_indices = @transform_2, window_bounds = array<i64: 1, 128, 128>}, {transform_indices = @transform_3, window_bounds = array<i64: 1, 129, 129>}, {transform_indices = @transform_4, window_bounds = array<i64: 1, 8, 128>}, {transform_indices = @transform_5, window_bounds = array<i64: 1, 8, 128>}]} {
    %0 = tpu.iota {dimensions = array<i32: 0>} : vector<128x128xi32>
    %1 = tpu.iota {dimensions = array<i32: 0>} : vector<8x128xi32>
    %cst = arith.constant 0.000000e+00 : f32
    %2 = vector.broadcast %cst : f32 to vector<1x129x129xf32>
    %c0 = arith.constant 0 : index
    %c0_0 = arith.constant 0 : index
    %c0_1 = arith.constant 0 : index
    %3 = vector.load %arg4[%c0, %c0_0, %c0_1] : memref<1x129x129xf32, #tpu.memory_space<vmem>>, vector<1x129x129xf32>
    tpu.vector_store %arg4[%c0, %c0_0, %c0_1], %2 {strides = array<i32>} : memref<1x129x129xf32, #tpu.memory_space<vmem>>, vector<1x129x129xf32>,
    %c0_2 = arith.constant 0 : index
    %c0_3 = arith.constant 0 : index
    %c0_4 = arith.constant 0 : index
    %4 = vector.load %arg1[%c0_2, %c0_3, %c0_4] : memref<1x128x64xf32, #tpu.memory_space<vmem>>, vector<1x128x64xf32>
    %5 = vector.shape_cast %4 : vector<1x128x64xf32> to vector<128x64xf32>
    %c0_5 = arith.constant 0 : index
    %c0_6 = arith.constant 0 : index
    %c0_7 = arith.constant 0 : index
    %6 = vector.load %arg2[%c0_5, %c0_6, %c0_7] : memref<1x128x64xf32, #tpu.memory_space<vmem>>, vector<1x128x64xf32>
    %7 = vector.shape_cast %6 : vector<1x128x64xf32> to vector<128x64xf32>
    %cst_8 = arith.constant dense<0.000000e+00> : vector<128x128xf32>
    %8 = tpu.matmul %5, %7, %cst_8 {dimension_numbers = #tpu.dot_dimension_numbers<[1], [1], [0], [0], [0, 0, 1, 0], [], []>} : vector<128x64xf32>, vector<128x64xf32>, vector<128x128xf32> -> vector<128x128xf32>
    %cst_9 = arith.constant dense<0.000000e+00> : vector<128x128xf32>
    %9 = tpu.matmul %7, %5, %cst_9 {dimension_numbers = #tpu.dot_dimension_numbers<[1], [1], [0], [0], [0, 0, 1, 0], [], []>} : vector<128x64xf32>, vector<128x64xf32>, vector<128x128xf32> -> vector<128x128xf32>
    %c0_10 = arith.constant 0 : index
    %c0_11 = arith.constant 0 : index
    %c0_12 = arith.constant 0 : index
    %10 = vector.load %arg3[%c0_10, %c0_11, %c0_12] : memref<1x128x128xf32, #tpu.memory_space<vmem>>, vector<1x128x128xf32>
    %11 = vector.shape_cast %10 : vector<1x128x128xf32> to vector<128x128xf32>
    %12 = vector.shape_cast %8 : vector<128x128xf32> to vector<1x128x128xf32>
    tpu.vector_store %arg3[%c0_10, %c0_11, %c0_12], %12 {strides = array<i32>} : memref<1x128x128xf32, #tpu.memory_space<vmem>>, vector<1x128x128xf32>,
    %cst_13 = arith.constant dense<0xFF800000> : vector<128xf32>
    %13 = vector.multi_reduction <maximumf>, %8, %cst_13 [0] : vector<128x128xf32> to vector<128xf32>
    %14 = vector.shape_cast %13 : vector<128xf32> to vector<1x128xf32>
    %15 = vector.broadcast %14 : vector<1x128xf32> to vector<128x128xf32>
    %16 = arith.cmpf oeq, %8, %15 : vector<128x128xf32>
    %c128_i32 = arith.constant 128 : i32
    %17 = vector.broadcast %c128_i32 : i32 to vector<128x128xi32>
    %18 = arith.select %16, %0, %17 : vector<128x128xi1>, vector<128x128xi32>
    %cst_14 = arith.constant dense<2147483647> : vector<128xi32>
    %19 = vector.multi_reduction <minsi>, %18, %cst_14 [0] : vector<128x128xi32> to vector<128xi32>
    %20 = vector.shape_cast %19 : vector<128xi32> to vector<1x128xi32>
    %21 = vector.broadcast %20 : vector<1x128xi32> to vector<128x128xi32>
    %22 = arith.cmpi eq, %0, %21 : vector<128x128xi32>
    %cst_15 = arith.constant 0xFF800000 : f32
    %23 = vector.broadcast %cst_15 : f32 to vector<128x128xf32>
    %24 = arith.select %22, %23, %8 : vector<128x128xi1>, vector<128x128xf32>
    %cst_16 = arith.constant dense<0xFF800000> : vector<128xf32>
    %25 = vector.multi_reduction <maximumf>, %24, %cst_16 [0] : vector<128x128xf32> to vector<128xf32>
    %26 = vector.shape_cast %25 : vector<128xf32> to vector<1x128xf32>
    %cst_17 = arith.constant dense<0xFF800000> : vector<128xf32>
    %27 = vector.multi_reduction <maximumf>, %9, %cst_17 [0] : vector<128x128xf32> to vector<128xf32>
    %28 = vector.shape_cast %27 : vector<128xf32> to vector<1x128xf32>
    %29 = vector.broadcast %28 : vector<1x128xf32> to vector<128x128xf32>
    %30 = arith.cmpf oeq, %9, %29 : vector<128x128xf32>
    %c128_i32_18 = arith.constant 128 : i32
    %31 = vector.broadcast %c128_i32_18 : i32 to vector<128x128xi32>
    %32 = arith.select %30, %0, %31 : vector<128x128xi1>, vector<128x128xi32>
    %cst_19 = arith.constant dense<2147483647> : vector<128xi32>
    %33 = vector.multi_reduction <minsi>, %32, %cst_19 [0] : vector<128x128xi32> to vector<128xi32>
    %34 = vector.shape_cast %33 : vector<128xi32> to vector<1x128xi32>
    %35 = vector.broadcast %34 : vector<1x128xi32> to vector<128x128xi32>
    %36 = arith.cmpi eq, %0, %35 : vector<128x128xi32>
    %cst_20 = arith.constant 0xFF800000 : f32
    %37 = vector.broadcast %cst_20 : f32 to vector<128x128xf32>
    %38 = arith.select %36, %37, %9 : vector<128x128xi1>, vector<128x128xf32>
    %cst_21 = arith.constant dense<0xFF800000> : vector<128xf32>
    %39 = vector.multi_reduction <maximumf>, %38, %cst_21 [0] : vector<128x128xf32> to vector<128xf32>
    %40 = vector.shape_cast %39 : vector<128xf32> to vector<1x128xf32>
    %c0_i32 = arith.constant 0 : i32
    %41 = vector.broadcast %c0_i32 : i32 to vector<8x128xi32>
    %42 = arith.cmpi eq, %1, %41 : vector<8x128xi32>
    %43 = arith.sitofp %34 : vector<1x128xi32> to vector<1x128xf32>
    %c1_i32 = arith.constant 1 : i32
    %44 = vector.broadcast %c1_i32 : i32 to vector<8x128xi32>
    %45 = arith.cmpi eq, %1, %44 : vector<8x128xi32>
    %c2_i32 = arith.constant 2 : i32
    %46 = vector.broadcast %c2_i32 : i32 to vector<8x128xi32>
    %47 = arith.cmpi eq, %1, %46 : vector<8x128xi32>
    %cst_22 = arith.constant 0.000000e+00 : f32
    %48 = vector.shape_cast %40 : vector<1x128xf32> to vector<1x128xf32>
    %49 = vector.broadcast %48 : vector<1x128xf32> to vector<8x128xf32>
    %50 = vector.broadcast %cst_22 : f32 to vector<8x128xf32>
    %51 = arith.select %47, %49, %50 : vector<8x128xi1>, vector<8x128xf32>
    %52 = vector.shape_cast %28 : vector<1x128xf32> to vector<1x128xf32>
    %53 = vector.broadcast %52 : vector<1x128xf32> to vector<8x128xf32>
    %54 = arith.select %45, %53, %51 : vector<8x128xi1>, vector<8x128xf32>
    %55 = vector.shape_cast %43 : vector<1x128xf32> to vector<1x128xf32>
    %56 = vector.broadcast %55 : vector<1x128xf32> to vector<8x128xf32>
    %57 = arith.select %42, %56, %54 : vector<8x128xi1>, vector<8x128xf32>
    %c0_23 = arith.constant 0 : index
    %c0_24 = arith.constant 0 : index
    %c0_25 = arith.constant 0 : index
    %58 = vector.load %arg5[%c0_23, %c0_24, %c0_25] : memref<1x8x128xf32, #tpu.memory_space<vmem>>, vector<1x8x128xf32>
    %59 = vector.shape_cast %58 : vector<1x8x128xf32> to vector<8x128xf32>
    %60 = vector.shape_cast %57 : vector<8x128xf32> to vector<1x8x128xf32>
    tpu.vector_store %arg5[%c0_23, %c0_24, %c0_25], %60 {strides = array<i32>} : memref<1x8x128xf32, #tpu.memory_space<vmem>>, vector<1x8x128xf32>,
    %c0_i32_26 = arith.constant 0 : i32
    %61 = vector.broadcast %c0_i32_26 : i32 to vector<8x128xi32>
    %62 = arith.cmpi eq, %1, %61 : vector<8x128xi32>
    %63 = arith.sitofp %20 : vector<1x128xi32> to vector<1x128xf32>
    %c1_i32_27 = arith.constant 1 : i32
    %64 = vector.broadcast %c1_i32_27 : i32 to vector<8x128xi32>
    %65 = arith.cmpi eq, %1, %64 : vector<8x128xi32>
    %c2_i32_28 = arith.constant 2 : i32
    %66 = vector.broadcast %c2_i32_28 : i32 to vector<8x128xi32>
    %67 = arith.cmpi eq, %1, %66 : vector<8x128xi32>
    %cst_29 = arith.constant 0.000000e+00 : f32
    %68 = vector.shape_cast %26 : vector<1x128xf32> to vector<1x128xf32>
    %69 = vector.broadcast %68 : vector<1x128xf32> to vector<8x128xf32>
    %70 = vector.broadcast %cst_29 : f32 to vector<8x128xf32>
    %71 = arith.select %67, %69, %70 : vector<8x128xi1>, vector<8x128xf32>
    %72 = vector.shape_cast %14 : vector<1x128xf32> to vector<1x128xf32>
    %73 = vector.broadcast %72 : vector<1x128xf32> to vector<8x128xf32>
    %74 = arith.select %65, %73, %71 : vector<8x128xi1>, vector<8x128xf32>
    %75 = vector.shape_cast %63 : vector<1x128xf32> to vector<1x128xf32>
    %76 = vector.broadcast %75 : vector<1x128xf32> to vector<8x128xf32>
    %77 = arith.select %62, %76, %74 : vector<8x128xi1>, vector<8x128xf32>
    %c0_30 = arith.constant 0 : index
    %c0_31 = arith.constant 0 : index
    %c0_32 = arith.constant 0 : index
    %78 = vector.load %arg6[%c0_30, %c0_31, %c0_32] : memref<1x8x128xf32, #tpu.memory_space<vmem>>, vector<1x8x128xf32>
    %79 = vector.shape_cast %78 : vector<1x8x128xf32> to vector<8x128xf32>
    %80 = vector.shape_cast %77 : vector<8x128xf32> to vector<1x8x128xf32>
    tpu.vector_store %arg6[%c0_30, %c0_31, %c0_32], %80 {strides = array<i32>} : memref<1x8x128xf32, #tpu.memory_space<vmem>>, vector<1x8x128xf32>,
    %cst_33 = arith.constant dense<0xFF800000> : vector<128xf32>
    %81 = vector.multi_reduction <maximumf>, %8, %cst_33 [1] : vector<128x128xf32> to vector<128xf32>
    %82 = vector.shape_cast %81 : vector<128xf32> to vector<128x1xf32>
    %83 = vector.broadcast %82 : vector<128x1xf32> to vector<128x128xf32>
    %84 = arith.subf %8, %83 : vector<128x128xf32>
    %85 = math.exp %84 : vector<128x128xf32>
    %cst_34 = arith.constant dense<0.000000e+00> : vector<128xf32>
    %86 = vector.multi_reduction <add>, %85, %cst_34 [1] : vector<128x128xf32> to vector<128xf32>
    %87 = vector.shape_cast %86 : vector<128xf32> to vector<128x1xf32>
    %88 = math.log %87 : vector<128x1xf32>
    %89 = arith.addf %82, %88 : vector<128x1xf32>
    %90 = vector.broadcast %14 : vector<1x128xf32> to vector<128x128xf32>
    %91 = arith.subf %8, %90 : vector<128x128xf32>
    %92 = math.exp %91 : vector<128x128xf32>
    %cst_35 = arith.constant dense<0.000000e+00> : vector<128xf32>
    %93 = vector.multi_reduction <add>, %92, %cst_35 [0] : vector<128x128xf32> to vector<128xf32>
    %94 = vector.shape_cast %93 : vector<128xf32> to vector<1x128xf32>
    %95 = math.log %94 : vector<1x128xf32>
    %96 = arith.addf %14, %95 : vector<1x128xf32>
    %97 = vector.broadcast %89 : vector<128x1xf32> to vector<128x128xf32>
    %98 = arith.subf %8, %97 : vector<128x128xf32>
    %99 = vector.broadcast %96 : vector<1x128xf32> to vector<128x128xf32>
    %100 = arith.subf %8, %99 : vector<128x128xf32>
    %101 = arith.addf %98, %100 : vector<128x128xf32>
    %c0_36 = arith.constant 0 : index
    %c0_37 = arith.constant 0 : index
    %c0_38 = arith.constant 0 : index
    %102 = vector.load %arg4[%c0_36, %c0_37, %c0_38] : memref<1x129x129xf32, #tpu.memory_space<vmem>>, vector<1x128x128xf32>
    %103 = vector.shape_cast %102 : vector<1x128x128xf32> to vector<128x128xf32>
    %104 = vector.shape_cast %101 : vector<128x128xf32> to vector<1x128x128xf32>
    tpu.vector_store %arg4[%c0_36, %c0_37, %c0_38], %104 {strides = array<i32>} : memref<1x129x129xf32, #tpu.memory_space<vmem>>, vector<1x128x128xf32>,
    return
  }
  func.func @transform_0(%arg0: i32) -> (i32, i32, i32) {
    %c0_i32 = arith.constant 0 : i32
    %c0_i32_0 = arith.constant 0 : i32
    %c0_i32_1 = arith.constant 0 : i32
    return %arg0, %c0_i32, %c0_i32_0 : i32, i32, i32
  }
  func.func @transform_1(%arg0: i32) -> (i32, i32, i32) {
    %c0_i32 = arith.constant 0 : i32
    %c0_i32_0 = arith.constant 0 : i32
    %c0_i32_1 = arith.constant 0 : i32
    return %arg0, %c0_i32, %c0_i32_0 : i32, i32, i32
  }
  func.func @transform_2(%arg0: i32) -> (i32, i32, i32) {
    %c0_i32 = arith.constant 0 : i32
    %c0_i32_0 = arith.constant 0 : i32
    %c0_i32_1 = arith.constant 0 : i32
    return %arg0, %c0_i32, %c0_i32_0 : i32, i32, i32
  }
  func.func @transform_3(%arg0: i32) -> (i32, i32, i32) {
    %c0_i32 = arith.constant 0 : i32
    %c0_i32_0 = arith.constant 0 : i32
    %c0_i32_1 = arith.constant 0 : i32
    return %arg0, %c0_i32, %c0_i32_0 : i32, i32, i32
  }
  func.func @transform_4(%arg0: i32) -> (i32, i32, i32) {
    %c0_i32 = arith.constant 0 : i32
    %c0_i32_0 = arith.constant 0 : i32
    %c0_i32_1 = arith.constant 0 : i32
    return %arg0, %c0_i32, %c0_i32_0 : i32, i32, i32
  }
  func.func @transform_5(%arg0: i32) -> (i32, i32, i32) {
    %c0_i32 = arith.constant 0 : i32
    %c0_i32_0 = arith.constant 0 : i32
    %c0_i32_1 = arith.constant 0 : i32
    return %arg0, %c0_i32, %c0_i32_0 : i32, i32, i32
  }
}

</mosaic_0001>

<bundles_post_ra>
// kernel: tpu_custom_call.1
= control target key start
LH: loop header
LB: loop body
LE: loop exit
PB: predicated region body
PF: predicated region fallthrough
CT: control target
= control target key end

     0   :  { %s3503_s0 = inlined_call_operand.vmem [shape: f32[2,128,64], index: 0, kind: input, shape index: {}]   ;;  %s3504_s1 = inlined_call_operand.vmem [shape: f32[2,128,64], index: 1, kind: input, shape index: {}]   ;;  %s3505_s2 = inlined_call_operand.hbm [shape: f32[2,128,128], index: 2, kind: output, shape index: {0}]   ;;  %s3506_s3 = inlined_call_operand.vmem [shape: f32[2,129,129], index: 3, kind: output, shape index: {1}]   ;;  %s3507_s4 = inlined_call_operand.hbm [shape: f32[2,8,128], index: 4, kind: output, shape index: {2}]   ;;  %s3508_s5 = inlined_call_operand.hbm [shape: f32[2,8,128], index: 5, kind: output, shape index: {3}]  }
   0x1   :  { %3573 = sst [smem:[#allocation46_spill]] %s3503_s0 }
   0x2   :  { %11 = vsyncpa [#allocation3], 0 }
   0x3   :  { %13 = vsyncpa [#allocation3 + $0x1], 0 }
   0x4   :  { %14 = vsyncpa [#allocation5], 0 }
   0x5   :  { %16 = vsyncpa [#allocation5 + $0x1], 0  ;;  %s2254_s18 = smov 0   ;;  %s2256_s19 = smov 0  }
   0x6   :  { %s2258_s20 = smov 0   ;;  %s2260_s21 = smov 0  }
   0x7 LB: > { %s2275_s22 = sadd.s32 4294967295, %s2216_s21   ;;  %s3572_s23 = sadd.s32 4294967294, %s2216_s21   ;;  %s2216_s21 = sphi %s2260_s21, %s3670_s21   ;;  %s2212_s20 = sphi %s2258_s20, %s3669_s20   ;;  %s2208_s19 = sphi %s2256_s19, %s3668_s19   ;;  %s2204_s18 = sphi %s2254_s18, %s3667_s18  }
   0x8   : > { %s2279_s24 = sadd.s32 1, %s2216_s21   ;;  %s81_s25 = sadd.s32 1, %s2212_s20 }
   0x9   : > { %s78_s26 = ssub.s32 %s2216_s21, %s2279_s24  ;;  %p91_p0 = scmp.ne.s32.totalorder %s2212_s20, %s2208_s19 }
   0xa   : > { %p79_p1 = scmp.eq.s32.totalorder %s78_s26, 0  ;;  %p92_p2 = scmp.eq.s32.totalorder %s2275_s22, 1 }
   0xb   : > { %p97_p3 = scmp.ne.s32.totalorder %s2208_s19, %s2204_s18  ;;  %p98_p4 = scmp.eq.s32.totalorder %s3572_s23, 1 }
   0xc   : > { %s2292_s27 = scalar_select %p79_p1, %s2212_s20, %s81_s25  }
   0xd   : > { %p2294_p5 = por %p92_p2, %p91_p0  ;;  %p2298_p6 = por %p98_p4, %p97_p3 }
   0xe   : > { %p1581_p7 = scmp.ge.s32.totalorder %s2216_s21, 1  ;;  %p210_p8 = scmp.lt.s32.totalorder %s2216_s21, 3 }
  0x10   : > { %p211_p9 = pnand %p1581_p7, %p210_p8 }
  0x12   : > { %214 = sbr.rel (%p211_p9) target bundleno = 662 (0x296), region = 28 }
  0x19   : > { %p258_p10 = scmp.lt.s32.totalorder %s2275_s22, 1  ;;  %vm358_vm0 = vcmask 523264   ;;  %s3578_s0 = sld [smem:[#allocation46_spill]] }
  0x1a   : > { %vm2316_vm1 = vmpackc.low %vm358_vm0, %vm358_vm0  ;;  %s2498_s13 = sand.u32 1, %s2208_s19   ;;  %s1370_s8 = sand.u32 1, %s2275_s22  }
  0x1b   : > { %s2306_s30 = scalar_select %p258_p10, %s2275_s22, 1 }
  0x1c   : > { %s1582_s14 = sshll.u32 %s2498_s13, 7  ;;  %s1659_s10 = sshll.u32 %s2275_s22, 7 }
  0x1d   : > { %s1663_s6 = sshll.u32 %s2306_s30, 7  ;;  %s2506_s15 = scalar_lea.vmem [#allocation2], %s1582_s14 }
  0x1e   : > { %s2312_s9 = scalar_lea.vmem %s3504_s1, %s1663_s6  ;;  %s1938_s16 = smul.u32 272, %s2306_s30 }
  0x1f   : > { %v342_v1 = vld [vmem:[%s2312_s9] sm:$0xff]  ;;  %v2322_v2 = vld [vmem:[%s2312_s9 + $0x8] sm:$0xff]  ;;  %v2325_v3 = vld [vmem:[%s2312_s9 + $0x10] sm:$0xff]  ;;  %s2337_s12 = scalar_lea.vmem %s3578_s0, %s1663_s6  ;;  %s1583_s30 = sshll.u32 %s2498_s13, 3 }
  0x20   : > { %v1842_v4 = vpack.c.bf16 %v2322_v2, %v342_v1  ;;  %v2329_v5 = vld [vmem:[%s2312_s9 + $0x18] sm:$0xff]  ;;  %1818 = vmatprep.mubr.msk.f32.mxu1 %vm358_vm0, %v342_v1  ;;  %v2346_v7 = vld [vmem:[%s2312_s9 + $0x20] sm:$0xff]  ;;  %v2350_v9 = vld [vmem:[%s2337_s12 + $0x8] sm:$0xff]  ;;  %s2835_s26 = scalar_lea.vmem %s3506_s3, %s1938_s16  ;;  %s3238_s6 = scalar_lea.vmem [#allocation6], %s1583_s30 }
  0x21   : > { %v1848_v6 = vpack.c.bf16 %v2329_v5, %v2325_v3  ;;  %v326_v8 = vld [vmem:[%s2337_s12] sm:$0xff]  ;;  %v2353_v10 = vld [vmem:[%s2312_s9 + $0x28] sm:$0xff]  ;;  %v2357_v11 = vld [vmem:[%s2337_s12 + $0x10] sm:$0xff]  ;;  %s250_s7 = scalar_lea.vmem [#allocation4], %s1583_s30  ;;  %s3306_s14 = scalar_lea.hbm %s3507_s4, %s1659_s10 }
  0x22   : > { %1844 = vmatprep.subr.msk.bf16.mxu0 %vm2316_vm1, %v1842_v4  ;;  %1762 = vmatprep.mubr.msk.f32.mxu0 %vm358_vm0, %v326_v8  ;;  %v2360_v12 = vld [vmem:[%s2337_s12 + $0x18] sm:$0xff]  ;;  %v1890_v13 = vpack.c.bf16 %v2350_v9, %v326_v8  ;;  %v1854_v15 = vpack.c.bf16 %v2353_v10, %v2346_v7  ;;  %v330_v16 = vld [vmem:[%s2337_s12 + $0x20] sm:$0xff]  ;;  %v331_v17 = vld [vmem:[%s2337_s12 + $0x28] sm:$0xff]  ;;  %s1408_s16 = sshll.u32 %s250_s7, 4  ;;  %s3313_s30 = scalar_lea.hbm %s3508_s5, %s1659_s10  ;;  %s3308_s16 = int_to_ptr.vmem [resolvable:$true] %s1408_s16 }
  0x23   : > { %1847 = vmatpush3.bf16.xpose.msk.msra.mxu0 %vm2316_vm1, %v1842_v4  ;;  %v1896_v14 = vpack.c.bf16 %v2360_v12, %v2357_v11  ;;  %v2380_v18 = vld [vmem:[%s2312_s9 + $0x30] sm:$0xff]  ;;  %v2383_v19 = vld [vmem:[%s2312_s9 + $0x38] sm:$0xff]  ;;  %v1902_v20 = vpack.c.bf16 %v331_v17, %v330_v16  ;;  %v350_v24 = vld [vmem:[%s2312_s9 + $0x40] sm:$0xff]  ;;  %s2094_s23 = scalar_lea.vmem %s3308_s16, 128  ;;  %s2219_s11 = smov [#allocation4]  }
  0x24   : > { %1850 = vmatprep.subr.msk.bf16.mxu0 %vm2316_vm1, %v1848_v6  ;;  %1892 = vmatprep.subr.msk.bf16.mxu1 %vm2316_vm1, %v1890_v13  ;;  %v1860_v21 = vpack.c.bf16 %v2383_v19, %v2380_v18  ;;  %v332_v22 = vld [vmem:[%s2337_s12 + $0x30] sm:$0xff]  ;;  %v333_v23 = vld [vmem:[%s2337_s12 + $0x38] sm:$0xff]  ;;  %v2399_v25 = vld [vmem:[%s2312_s9 + $0x48] sm:$0xff]  ;;  %p2095_p11 = scmp.ne.s32.totalorder %s3308_s16, %s2094_s23 }
  0x25   : > { %1895 = vmatpush3.bf16.xpose.msk.msra.mxu1 %vm2316_vm1, %v1890_v13  ;;  %v1908_v26 = vpack.c.bf16 %v333_v23, %v332_v22  ;;  %v1866_v27 = vpack.c.bf16 %v2399_v25, %v350_v24  ;;  %v334_v28 = vld [vmem:[%s2337_s12 + $0x40] sm:$0xff]  ;;  %v335_v29 = vld [vmem:[%s2337_s12 + $0x48] sm:$0xff]  ;;  %v352_v30 = vld [vmem:[%s2312_s9 + $0x50] sm:$0xff] }
  0x26   : > { %1898 = vmatprep.subr.msk.bf16.mxu1 %vm2316_vm1, %v1896_v14  ;;  %v353_v31 = vld [vmem:[%s2312_s9 + $0x58] sm:$0xff]  ;;  %v1914_v32 = vpack.c.bf16 %v335_v29, %v334_v28  ;;  %v336_v34 = vld [vmem:[%s2337_s12 + $0x50] sm:$0xff]  ;;  %v354_v36 = vld [vmem:[%s2312_s9 + $0x60] sm:$0xff]  ;;  %p2096_p12 = pnand %p2095_p11, %p2294_p5 }
  0x27   : > { %v1872_v33 = vpack.c.bf16 %v353_v31, %v352_v30  ;;  %v337_v35 = vld [vmem:[%s2337_s12 + $0x58] sm:$0xff]  ;;  %v355_v37 = vld [vmem:[%s2312_s9 + $0x68] sm:$0xff]  ;;  %v338_v40 = vld [vmem:[%s2337_s12 + $0x60] sm:$0xff] }
  0x28   : > { %v1920_v38 = vpack.c.bf16 %v337_v35, %v336_v34  ;;  %v1878_v39 = vpack.c.bf16 %v355_v37, %v354_v36  ;;  %v339_v41 = vld [vmem:[%s2337_s12 + $0x68] sm:$0xff]  ;;  %v356_v42 = vld [vmem:[%s2312_s9 + $0x70] sm:$0xff]  ;;  %v357_v43 = vld [vmem:[%s2312_s9 + $0x78] sm:$0xff]  ;;  %s1389_s9 = sshll.u32 %s2506_s15, 4  ;;  %p2097_p13 = pneg %p2096_p12  ;;  %s3300_s9 = int_to_ptr.vmem [resolvable:$true] %s1389_s9 }
  0x29   : > { %v1926_v44 = vpack.c.bf16 %v339_v41, %v338_v40  ;;  %v1884_v45 = vpack.c.bf16 %v357_v43, %v356_v42  ;;  %v340_v46 = vld [vmem:[%s2337_s12 + $0x70] sm:$0xff]  ;;  %v341_v47 = vld [vmem:[%s2337_s12 + $0x78] sm:$0xff]  ;;  %s2098_s12 = sshll.u32 %s2219_s11, 4  ;;  %s2099_s12 = int_to_ptr.vmem [resolvable:$false] %s2098_s12 }
  0x2a   : > { %v1932_v48 = vpack.c.bf16 %v341_v47, %v340_v46  ;;  %p2101_p0 = scmp.lt.s32.totalorder %s3308_s16, %s2099_s12 }
  0x2b   : > { %1853 = vmatpush3.bf16.xpose.msk.msra.mxu0 %vm2316_vm1, %v1848_v6 }
  0x2c   : > { %1856 = vmatprep.subr.msk.bf16.mxu0 %vm2316_vm1, %v1854_v15 }
  0x2d   : > { %1901 = vmatpush3.bf16.xpose.msk.msra.mxu1 %vm2316_vm1, %v1896_v14 }
  0x2e   : > { %1904 = vmatprep.subr.msk.bf16.mxu1 %vm2316_vm1, %v1902_v20 }
  0x33   : > { %1859 = vmatpush3.bf16.xpose.msk.msra.mxu0 %vm2316_vm1, %v1854_v15 }
  0x34   : > { %1862 = vmatprep.subr.msk.bf16.mxu0 %vm2316_vm1, %v1860_v21 }
  0x35   : > { %1907 = vmatpush3.bf16.xpose.msk.msra.mxu1 %vm2316_vm1, %v1902_v20 }
  0x36   : > { %1910 = vmatprep.subr.msk.bf16.mxu1 %vm2316_vm1, %v1908_v26 }
  0x3b   : > { %1865 = vmatpush3.bf16.xpose.msk.msra.mxu0 %vm2316_vm1, %v1860_v21 }
  0x3c   : > { %1868 = vmatprep.subr.msk.bf16.mxu0 %vm2316_vm1, %v1866_v27 }
  0x3d   : > { %1913 = vmatpush3.bf16.xpose.msk.msra.mxu1 %vm2316_vm1, %v1908_v26 }
  0x3e   : > { %1916 = vmatprep.subr.msk.bf16.mxu1 %vm2316_vm1, %v1914_v32 }
  0x43   : > { %1871 = vmatpush3.bf16.xpose.msk.msra.mxu0 %vm2316_vm1, %v1866_v27 }
  0x44   : > { %1874 = vmatprep.subr.msk.bf16.mxu0 %vm2316_vm1, %v1872_v33 }
  0x45   : > { %1919 = vmatpush3.bf16.xpose.msk.msra.mxu1 %vm2316_vm1, %v1914_v32 }
  0x46   : > { %1922 = vmatprep.subr.msk.bf16.mxu1 %vm2316_vm1, %v1920_v38 }
  0x4b   : > { %1877 = vmatpush3.bf16.xpose.msk.msra.mxu0 %vm2316_vm1, %v1872_v33 }
  0x4c   : > { %1880 = vmatprep.subr.msk.bf16.mxu0 %vm2316_vm1, %v1878_v39 }
  0x4d   : > { %1925 = vmatpush3.bf16.xpose.msk.msra.mxu1 %vm2316_vm1, %v1920_v38 }
  0x4e   : > { %1928 = vmatprep.subr.msk.bf16.mxu1 %vm2316_vm1, %v1926_v44 }
  0x53   : > { %1883 = vmatpush3.bf16.xpose.msk.msra.mxu0 %vm2316_vm1, %v1878_v39 }
  0x54   : > { %1886 = vmatprep.subr.msk.bf16.mxu0 %vm2316_vm1, %v1884_v45 }
  0x55   : > { %1931 = vmatpush3.bf16.xpose.msk.msra.mxu1 %vm2316_vm1, %v1926_v44 }
  0x56   : > { %1934 = vmatprep.subr.msk.bf16.mxu1 %vm2316_vm1, %v1932_v48 }
  0x5b   : > { %1889 = vmatpush3.bf16.xpose.msk.msra.mxu0 %vm2316_vm1, %v1884_v45 }
  0x5d   : > { %1937 = vmatpush3.bf16.xpose.msk.msra.mxu1 %vm2316_vm1, %v1932_v48 }
  0x62   : > { %1763 = vmatmul.mubr.msk.f32.vlgmr.msra.gmra.mrb[0].mxu0 %vm358_vm0, %v2350_v9 }
  0x63   : > { %1765 = vmatprep.mubr.msk.f32.mxu0 %vm358_vm0, %v2357_v11 }
  0x64   : > { %1819 = vmatmul.mubr.msk.f32.vlgmr.msra.gmra.mrb[0].mxu1 %vm358_vm0, %v2322_v2 }
  0x65   : > { %1821 = vmatprep.mubr.msk.f32.mxu1 %vm358_vm0, %v2325_v3 }
  0x66   : > { %1766 = vmatmul.mubr.msk.f32.gmra.mrb[2].mxu0 %vm358_vm0, %v2360_v12 }
  0x67   : > { %1768 = vmatprep.mubr.msk.f32.mxu0 %vm358_vm0, %v330_v16 }
  0x68   : > { %1822 = vmatmul.mubr.msk.f32.gmra.mrb[2].mxu1 %vm358_vm0, %v2329_v5 }
  0x69   : > { %1824 = vmatprep.mubr.msk.f32.mxu1 %vm358_vm0, %v2346_v7 }
  0x6a   : > { %1769 = vmatmul.mubr.msk.f32.gmra.mrb[4].mxu0 %vm358_vm0, %v331_v17  ;;  %v273_v17 = vlaneseq }
  0x6b   : > { %1771 = vmatprep.mubr.msk.f32.mxu0 %vm358_vm0, %v332_v22 }
  0x6c   : > { %1825 = vmatmul.mubr.msk.f32.gmra.mrb[4].mxu1 %vm358_vm0, %v2353_v10  ;;  %v2599_v20 = vshrl.u32 %v273_v17, 7 }
  0x6d   : > { %1827 = vmatprep.mubr.msk.f32.mxu1 %vm358_vm0, %v2380_v18 }
  0x6e   : > { %1772 = vmatmul.mubr.msk.f32.gmra.mrb[6].mxu0 %vm358_vm0, %v333_v23  ;;  %3591 = vst [vmem:[#allocation21_spill] sm:$0xff] %v2599_v20  ;;  %v2602_v23 = vadd.s32 8, %v2599_v20  ;;  %v2611_v26 = vadd.s32 32, %v2599_v20  ;;  %v2614_v27 = vadd.s32 40, %v2599_v20  ;;  %v2628_v32 = vadd.s32 72, %v2599_v20 }
  0x6f   : > { %1774 = vmatprep.mubr.msk.f32.mxu0 %vm358_vm0, %v334_v28  ;;  %v2617_v28 = vadd.s32 48, %v2599_v20  ;;  %v2631_v33 = vadd.s32 80, %v2599_v20  ;;  %v2658_v44 = vadd.s32 120, %v2599_v20 }
  0x70   : > { %1828 = vmatmul.mubr.msk.f32.gmra.mrb[6].mxu1 %vm358_vm0, %v2383_v19  ;;  %3592 = vst [vmem:[#allocation22_spill] sm:$0xff] %v2602_v23  ;;  %3594 = vst [vmem:[#allocation24_spill] sm:$0xff] %v2611_v26 }
  0x71   : > { %1830 = vmatprep.mubr.msk.f32.mxu1 %vm358_vm0, %v350_v24  ;;  %v2605_v24 = vadd.s32 16, %v2599_v20  ;;  %3595 = vst [vmem:[#allocation25_spill] sm:$0xff] %v2614_v27  ;;  %3599 = vst [vmem:[#allocation29_spill] sm:$0xff] %v2628_v32 }
  0x72   : > { %1775 = vmatmul.mubr.msk.f32.gmra.mrb[8].mxu0 %vm358_vm0, %v335_v29 }
  0x73   : > { %1777 = vmatprep.mubr.msk.f32.mxu0 %vm358_vm0, %v336_v34  ;;  %v2634_v34 = vadd.s32 88, %v2599_v20 }
  0x74   : > { %1831 = vmatmul.mubr.msk.f32.gmra.mrb[8].mxu1 %vm358_vm0, %v2399_v25  ;;  %v2608_v25 = vadd.s32 24, %v2599_v20 }
  0x75   : > { %1833 = vmatprep.mubr.msk.f32.mxu1 %vm358_vm0, %v352_v30  ;;  %v2622_v30 = vadd.s32 56, %v2599_v20  ;;  %3600 = vst [vmem:[#allocation30_spill] sm:$0xff] %v2634_v34 }
  0x76   : > { %1778 = vmatmul.mubr.msk.f32.gmra.mrb[10].mxu0 %vm358_vm0, %v337_v35  ;;  %3593 = vst [vmem:[#allocation23_spill] sm:$0xff] %v2608_v25  ;;  %v2637_v35 = vadd.s32 96, %v2599_v20 }
  0x77   : > { %1780 = vmatprep.mubr.msk.f32.mxu0 %vm358_vm0, %v338_v40  ;;  %3597 = vst [vmem:[#allocation27_spill] sm:$0xff] %v2622_v30  ;;  %v2649_v40 = vadd.s32 112, %v2599_v20 }
  0x78   : > { %1834 = vmatmul.mubr.msk.f32.gmra.mrb[10].mxu1 %vm358_vm0, %v353_v31  ;;  %v2625_v31 = vadd.s32 64, %v2599_v20  ;;  %3601 = vst [vmem:[#allocation31_spill] sm:$0xff] %v2637_v35 }
  0x79   : > { %1836 = vmatprep.mubr.msk.f32.mxu1 %vm358_vm0, %v354_v36  ;;  %v2640_v36 = vadd.s32 104, %v2599_v20 }
  0x7a   : > { %1781 = vmatmul.mubr.msk.f32.gmra.mrb[12].mxu0 %vm358_vm0, %v339_v41  ;;  %3598 = vst [vmem:[#allocation28_spill] sm:$0xff] %v2625_v31 }
  0x7b   : > { %1783 = vmatprep.mubr.msk.f32.mxu0 %vm358_vm0, %v340_v46  ;;  %3602 = vst [vmem:[#allocation32_spill] sm:$0xff] %v2640_v36 }
  0x7c   : > { %1837 = vmatmul.mubr.msk.f32.gmra.mrb[12].mxu1 %vm358_vm0, %v355_v37 }
  0x7d   : > { %1839 = vmatprep.mubr.msk.f32.mxu1 %vm358_vm0, %v356_v42 }
  0x7e   : > { %1784 = vmatmul.mubr.msk.f32.gmra.mrb[14].mxu0 %vm358_vm0, %v341_v47 }
  0x80   : > { %1840 = vmatmul.mubr.msk.f32.gmra.mrb[14].mxu1 %vm358_vm0, %v357_v43 }
 0x135   : > { %v2501_v49 = vpop.f32.mrb[0].mxu0 }
 0x136   : > { %3579 = vst [vmem:[#allocation9_spill] sm:$0xff] %v2501_v49  ;;  %1066 = vmax.xlane.f32.xlu0 %v2501_v49  ;;  %v2504_v50 = vpop.f32.mrb[1].mxu0  ;;  %746 = vst [vmem:[%s2506_s15 + $0x8] sm:$0xff] %v2501_v49 }
 0x137   : > { %3580 = vst [vmem:[#allocation10_spill] sm:$0xff] %v2504_v50  ;;  %745 = vst [vmem:[%s2506_s15] sm:$0xff] %v2504_v50 }
 0x139   : > { %v2512_v51 = vpop.f32.mrb[2].mxu0 }
 0x13a   : > { %3581 = vst [vmem:[#allocation11_spill] sm:$0xff] %v2512_v51  ;;  %1064 = vmax.xlane.f32.xlu0 %v2504_v50  ;;  %1070 = vmax.xlane.f32.xlu1 %v2512_v51  ;;  %v2516_v52 = vpop.f32.mrb[3].mxu0  ;;  %748 = vst [vmem:[%s2506_s15 + $0x18] sm:$0xff] %v2512_v51 }
 0x13b   : > { %747 = vst [vmem:[%s2506_s15 + $0x10] sm:$0xff] %v2516_v52 }
 0x13d   : > { %v2522_v53 = vpop.f32.mrb[4].mxu0 }
 0x13e   : > { %3582 = vst [vmem:[#allocation12_spill] sm:$0xff] %v2522_v53  ;;  %v762_v54 = vmax.f32 %v2501_v49, %v2522_v53  ;;  %1068 = vmax.xlane.f32.xlu1 %v2516_v52  ;;  %v2527_v55 = vpop.f32.mrb[5].mxu0  ;;  %750 = vst [vmem:[%s2506_s15 + $0x28] sm:$0xff] %v2522_v53 }
 0x13f   : > { %3583 = vst [vmem:[#allocation13_spill] sm:$0xff] %v2527_v55  ;;  %v761_v56 = vmax.f32 %v2504_v50, %v2527_v55  ;;  %1072 = vmax.xlane.f32.xlu0 %v2527_v55  ;;  %749 = vst [vmem:[%s2506_s15 + $0x20] sm:$0xff] %v2527_v55 }
 0x141   : > { %v2536_v57 = vpop.f32.mrb[6].mxu0 }
 0x142   : > { %3584 = vst [vmem:[#allocation14_spill] sm:$0xff] %v2536_v57  ;;  %v764_v58 = vmax.f32 %v2512_v51, %v2536_v57  ;;  %1074 = vmax.xlane.f32.xlu1 %v2522_v53  ;;  %v2541_v59 = vpop.f32.mrb[7].mxu0  ;;  %752 = vst [vmem:[%s2506_s15 + $0x38] sm:$0xff] %v2536_v57 }
 0x143   : > { %1076 = vmax.xlane.f32.xlu0 %v2541_v59  ;;  %v763_v60 = vmax.f32 %v2516_v52, %v2541_v59  ;;  %751 = vst [vmem:[%s2506_s15 + $0x30] sm:$0xff] %v2541_v59 }
 0x145   : > { %v2550_v61 = vpop.f32.mrb[8].mxu0 }
 0x146   : > { %3585 = vst [vmem:[#allocation15_spill] sm:$0xff] %v2550_v61  ;;  %v766_v62 = vmax.f32 %v762_v54, %v2550_v61  ;;  %1078 = vmax.xlane.f32.xlu1 %v2536_v57  ;;  %v2554_v63 = vpop.f32.mrb[9].mxu0  ;;  %754 = vst [vmem:[%s2506_s15 + $0x48] sm:$0xff] %v2550_v61 }
 0x147   : > { %3586 = vst [vmem:[#allocation16_spill] sm:$0xff] %v2554_v63  ;;  %v765_v0 = vmax.f32 %v761_v56, %v2554_v63  ;;  %1080 = vmax.xlane.f32.xlu0 %v2554_v63  ;;  %753 = vst [vmem:[%s2506_s15 + $0x40] sm:$0xff] %v2554_v63 }
 0x149   : > { %v2562_v1 = vpop.f32.mrb[10].mxu0 }
 0x14a   : > { %3587 = vst [vmem:[#allocation17_spill] sm:$0xff] %v2562_v1  ;;  %v768_v2 = vmax.f32 %v764_v58, %v2562_v1  ;;  %1082 = vmax.xlane.f32.xlu1 %v2550_v61  ;;  %v2566_v3 = vpop.f32.mrb[11].mxu0  ;;  %756 = vst [vmem:[%s2506_s15 + $0x58] sm:$0xff] %v2562_v1 }
 0x14b   : > { %1084 = vmax.xlane.f32.xlu0 %v2566_v3  ;;  %v767_v4 = vmax.f32 %v763_v60, %v2566_v3  ;;  %755 = vst [vmem:[%s2506_s15 + $0x50] sm:$0xff] %v2566_v3 }
 0x14d   : > { %v2574_v5 = vpop.f32.mrb[12].mxu0 }
 0x14e   : > { %3588 = vst [vmem:[#allocation18_spill] sm:$0xff] %v2574_v5  ;;  %v770_v6 = vmax.f32 %v766_v62, %v2574_v5  ;;  %1086 = vmax.xlane.f32.xlu1 %v2562_v1  ;;  %v2578_v7 = vpop.f32.mrb[13].mxu0  ;;  %758 = vst [vmem:[%s2506_s15 + $0x68] sm:$0xff] %v2574_v5  ;;  %v2676_v62 = vpop.f32.mrb[0].mxu1 }
 0x14f   : > { %3589 = vst [vmem:[#allocation19_spill] sm:$0xff] %v2578_v7  ;;  %v769_v8 = vmax.f32 %v765_v0, %v2578_v7  ;;  %1088 = vmax.xlane.f32.xlu0 %v2578_v7  ;;  %757 = vst [vmem:[%s2506_s15 + $0x60] sm:$0xff] %v2578_v7 }
 0x151   : > { %v2586_v9 = vpop.f32.mrb[14].mxu0  ;;  %v773_v10 = vmax.f32 %v769_v8, %v770_v6 }
 0x152   : > { %3590 = vst [vmem:[#allocation20_spill] sm:$0xff] %v2586_v9  ;;  %1090 = vmax.xlane.f32.xlu1 %v2574_v5  ;;  %v2589_v11 = vpop.f32.mrb[15].mxu0  ;;  %v772_v12 = vmax.f32 %v768_v2, %v2586_v9  ;;  %760 = vst [vmem:[%s2506_s15 + $0x78] sm:$0xff] %v2586_v9 }
 0x153   : > { %v771_v13 = vmax.f32 %v767_v4, %v2589_v11  ;;  %1092 = vmax.xlane.f32.xlu0 %v2589_v11  ;;  %759 = vst [vmem:[%s2506_s15 + $0x70] sm:$0xff] %v2589_v11 }
 0x155   : > { %v774_v14 = vmax.f32 %v771_v13, %v772_v12 }
 0x156   : > { %1094 = vmax.xlane.f32.xlu1 %v2586_v9 }
 0x157   : > { %v775_v15 = vmax.f32 %v773_v10, %v774_v14 }
 0x159   : > { %v776_v16 = vrot.slane %v775_v15, 4 }
 0x15b   : > { %v777_v18 = vmax.f32 %v775_v15, %v776_v16 }
 0x15d   : > { %v778_v19 = vrot.slane %v777_v18, 2 }
 0x15f   : > { %v779_v21 = vmax.f32 %v777_v18, %v778_v19 }
 0x161   : > { %v780_v22 = vrot.slane %v779_v21, 1 }
 0x163   : > { %v2619_v29 = vmax.f32 %v779_v21, %v780_v22 }
 0x165   : > { %3596 = vst [vmem:[#allocation26_spill] sm:$0xff] %v2619_v29  ;;  %v1224_v37 = vsub.f32 %v2504_v50, %v2619_v29  ;;  %v1225_v38 = vsub.f32 %v2501_v49, %v2619_v29  ;;  %v1226_v39 = vsub.f32 %v2516_v52, %v2619_v29  ;;  %v1227_v41 = vsub.f32 %v2512_v51, %v2619_v29 }
 0x166   : > { %v1228_v42 = vsub.f32 %v2527_v55, %v2619_v29  ;;  %v1229_v43 = vsub.f32 %v2522_v53, %v2619_v29  ;;  %v1230_v45 = vsub.f32 %v2541_v59, %v2619_v29  ;;  %v1231_v46 = vsub.f32 %v2536_v57, %v2619_v29 }
 0x167   : > { %v1232_v47 = vsub.f32 %v2554_v63, %v2619_v29  ;;  %v1233_v48 = vsub.f32 %v2550_v61, %v2619_v29  ;;  %v1234_v54 = vsub.f32 %v2566_v3, %v2619_v29  ;;  %v1235_v56 = vsub.f32 %v2562_v1, %v2619_v29 }
 0x168   : > { %v1236_v58 = vsub.f32 %v2578_v7, %v2619_v29  ;;  %v1237_v60 = vsub.f32 %v2574_v5, %v2619_v29  ;;  %v1238_v0 = vsub.f32 %v2589_v11, %v2619_v29  ;;  %v1240_v2 = vmul.f32 1.442695, %v1224_v37 }
 0x169   : > { %v1242_v4 = vmul.f32 1.442695, %v1225_v38  ;;  %v1244_v6 = vmul.f32 1.442695, %v1226_v39  ;;  %v1239_v8 = vsub.f32 %v2586_v9, %v2619_v29  ;;  %v1246_v10 = vmul.f32 1.442695, %v1227_v41 }
 0x16a   : > { %v1248_v12 = vmul.f32 1.442695, %v1228_v42  ;;  %vm782_vm2 = vcmp.eq.f32.partialorder %v2504_v50, %v2619_v29  ;;  %1991 = vpow2.f32 %v1240_v2  ;;  %v1250_v13 = vmul.f32 1.442695, %v1229_v43  ;;  %v2688_v39 = vpop.f32.mrb[1].mxu1 }
 0x16b   : > { %v1252_v14 = vmul.f32 1.442695, %v1230_v45  ;;  %v1254_v15 = vmul.f32 1.442695, %v1231_v46  ;;  %1993 = vpow2.f32 %v1242_v4  ;;  %v1256_v16 = vmul.f32 1.442695, %v1232_v47 }
 0x16c   : > { %v1258_v17 = vmul.f32 1.442695, %v1233_v48  ;;  %v1260_v18 = vmul.f32 1.442695, %v1234_v54  ;;  %1995 = vpow2.f32 %v1244_v6  ;;  %v1262_v19 = vmul.f32 1.442695, %v1235_v56 }
 0x16d   : > { %v1264_v21 = vmul.f32 1.442695, %v1236_v58  ;;  %v1266_v22 = vmul.f32 1.442695, %v1237_v60  ;;  %1997 = vpow2.f32 %v1246_v10  ;;  %v2684_v37 = vmul.f32 1.442695, %v1238_v0 }
 0x16e   : > { %v2686_v38 = vmul.f32 1.442695, %v1239_v8  ;;  %vm783_vm3 = vcmp.eq.f32.partialorder %v2501_v49, %v2619_v29  ;;  %1999 = vpow2.f32 %v1248_v12  ;;  %v2692_v41 = vpop.f32.mrb[2].mxu1  ;;  %vm784_vm4 = vcmp.eq.f32.partialorder %v2516_v52, %v2619_v29 }
 0x16f   : > { %vm785_vm5 = vcmp.eq.f32.partialorder %v2512_v51, %v2619_v29  ;;  %vm786_vm6 = vcmp.eq.f32.partialorder %v2527_v55, %v2619_v29  ;;  %2001 = vpow2.f32 %v1250_v13  ;;  %v2700_v42 = vpop.f32.mrb[3].mxu1  ;;  %vm787_vm7 = vcmp.eq.f32.partialorder %v2522_v53, %v2619_v29 }
 0x170   : > { %vm788_vm8 = vcmp.eq.f32.partialorder %v2541_v59, %v2619_v29  ;;  %vm789_vm9 = vcmp.eq.f32.partialorder %v2536_v57, %v2619_v29  ;;  %2003 = vpow2.f32 %v1252_v14  ;;  %v2708_v43 = vpop.f32.mrb[4].mxu1  ;;  %vm790_vm10 = vcmp.eq.f32.partialorder %v2554_v63, %v2619_v29 }
 0x171   : > { %vm791_vm11 = vcmp.eq.f32.partialorder %v2550_v61, %v2619_v29  ;;  %vm792_vm12 = vcmp.eq.f32.partialorder %v2566_v3, %v2619_v29  ;;  %2005 = vpow2.f32 %v1254_v15  ;;  %v907_v45 = vmax.f32 %v2676_v62, %v2708_v43  ;;  %v2718_v46 = vpop.f32.mrb[5].mxu1 }
 0x172   : > { %vm793_vm13 = vcmp.eq.f32.partialorder %v2562_v1, %v2619_v29  ;;  %vm794_vm14 = vcmp.eq.f32.partialorder %v2578_v7, %v2619_v29  ;;  %2007 = vpow2.f32 %v1256_v16  ;;  %v906_v47 = vmax.f32 %v2688_v39, %v2718_v46  ;;  %v2726_v48 = vpop.f32.mrb[6].mxu1 }
 0x173   : > { %3603 = vst [vmem:[#allocation33_spill] sm:$0xff] %v2726_v48  ;;  %vm795_vm15 = vcmp.eq.f32.partialorder %v2574_v5, %v2619_v29  ;;  %vm796_vm0 = vcmp.eq.f32.partialorder %v2589_v11, %v2619_v29  ;;  %2009 = vpow2.f32 %v1258_v17  ;;  %v909_v54 = vmax.f32 %v2692_v41, %v2726_v48  ;;  %v2734_v56 = vpop.f32.mrb[7].mxu1 }
 0x174   : > { %vm797_vm1 = vcmp.eq.f32.partialorder %v2586_v9, %v2619_v29  ;;  %v798_v58 = vsel %vm782_vm2, %v2599_v20, 128  ;;  %v1992_v60 = vpop.eup %1991  ;;  %2011 = vpow2.f32 %v1260_v18  ;;  %v908_v0 = vmax.f32 %v2700_v42, %v2734_v56  ;;  %v2744_v2 = vpop.f32.mrb[8].mxu1 }
 0x175   : > { %3604 = vst [vmem:[#allocation34_spill] sm:$0xff] %v2744_v2  ;;  %v799_v4 = vsel %vm783_vm3, %v2602_v23, 128  ;;  %v800_v6 = vsel %vm784_vm4, %v2605_v24, 128  ;;  %v1994_v8 = vpop.eup %1993  ;;  %2013 = vpow2.f32 %v1262_v19  ;;  %v911_v10 = vmax.f32 %v907_v45, %v2744_v2  ;;  %v2755_v12 = vpop.f32.mrb[9].mxu1 }
 0x176   : > { %3605 = vst [vmem:[#allocation35_spill] sm:$0xff] %v2755_v12  ;;  %v801_v13 = vsel %vm785_vm5, %v2608_v25, 128  ;;  %v802_v14 = vsel %vm786_vm6, %v2611_v26, 128  ;;  %v1996_v15 = vpop.eup %1995  ;;  %2015 = vpow2.f32 %v1264_v21  ;;  %v1272_v16 = vadd.f32 %v1994_v8, %v1992_v60  ;;  %v2766_v18 = vpop.f32.mrb[10].mxu1 }
 0x177   : > { %v910_v17 = vmax.f32 %v906_v47, %v2755_v12  ;;  %3606 = vst [vmem:[#allocation36_spill] sm:$0xff] %v2766_v18  ;;  %v803_v19 = vsel %vm787_vm7, %v2614_v27, 128  ;;  %v1998_v45 = vpop.eup %1997  ;;  %2017 = vpow2.f32 %v1266_v22  ;;  %v2773_v51 = vmax.f32 %v909_v54, %v2766_v18  ;;  %v2775_v49 = vpop.f32.mrb[11].mxu1 }
 0x178   : > { %3607 = vst [vmem:[#allocation37_spill] sm:$0xff] %v2775_v49  ;;  %v804_v21 = vsel %vm788_vm8, %v2617_v28, 128  ;;  %v805_v47 = vsel %vm789_vm9, %v2622_v30, 128  ;;  %v2000_v60 = vpop.eup %1999  ;;  %v1273_v8 = vadd.f32 %v1996_v15, %v1272_v16  ;;  %v912_v53 = vmax.f32 %v908_v0, %v2775_v49  ;;  %v2786_v22 = vpop.f32.mrb[12].mxu1 }
 0x179   : > { %3608 = vst [vmem:[#allocation38_spill] sm:$0xff] %v2786_v22  ;;  %v806_v54 = vsel %vm790_vm10, %v2625_v31, 128  ;;  %v807_v55 = vsel %vm791_vm11, %v2628_v32, 128  ;;  %v2002_v50 = vpop.eup %2001  ;;  %v915_v57 = vmax.f32 %v911_v10, %v2786_v22  ;;  %v2797_v30 = vpop.f32.mrb[13].mxu1  ;;  %v808_v0 = vsel %vm792_vm12, %v2631_v33, 128 }
 0x17a   : > { %3609 = vst [vmem:[#allocation39_spill] sm:$0xff] %v2797_v30  ;;  %v809_v15 = vsel %vm793_vm13, %v2634_v34, 128  ;;  %v810_v16 = vsel %vm794_vm14, %v2637_v35, 128  ;;  %v2004_v61 = vpop.eup %2003  ;;  %v1274_v63 = vadd.f32 %v1998_v45, %v1273_v8  ;;  %v914_v10 = vmax.f32 %v910_v17, %v2797_v30  ;;  %v2812_v32 = vpop.f32.mrb[14].mxu1 }
 0x17b   : > { %3610 = vst [vmem:[#allocation40_spill] sm:$0xff] %v2812_v32  ;;  %v811_v31 = vsel %vm795_vm15, %v2640_v36, 128  ;;  %v812_v1 = vsel %vm796_vm0, %v2649_v40, 128  ;;  %v2006_v34 = vpop.eup %2005  ;;  %v917_v7 = vmax.f32 %v2773_v51, %v2812_v32  ;;  %v2824_v35 = vpop.f32.mrb[15].mxu1  ;;  %v813_v17 = vsel %vm797_vm1, %v2658_v44, 128 }
 0x17c   : > { %3611 = vst [vmem:[#allocation41_spill] sm:$0xff] %v2824_v35  ;;  %vm814_vm2 = vcmp.lt.s32.totalorder %v798_v58, %v802_v14  ;;  %vm816_vm3 = vcmp.lt.s32.totalorder %v799_v4, %v803_v19  ;;  %v2008_v45 = vpop.eup %2007  ;;  %v1275_v8 = vadd.f32 %v2000_v60, %v1274_v63  ;;  %v918_v5 = vmax.f32 %v914_v10, %v915_v57 }
 0x17d   : > { %v815_v36 = vsel %vm814_vm2, %v798_v58, %v802_v14  ;;  %v817_v27 = vsel %vm816_vm3, %v799_v4, %v803_v19  ;;  %v2010_v26 = vpop.eup %2009  ;;  %vm818_vm4 = vcmp.lt.s32.totalorder %v800_v6, %v804_v21  ;;  %vm820_vm5 = vcmp.lt.s32.totalorder %v801_v13, %v805_v47 }
 0x17e   : > { %vm822_vm6 = vcmp.lt.s32.totalorder %v815_v36, %v806_v54  ;;  %vm824_vm7 = vcmp.lt.s32.totalorder %v817_v27, %v807_v55  ;;  %v2012_v51 = vpop.eup %2011  ;;  %v1276_v25 = vadd.f32 %v2002_v50, %v1275_v8  ;;  %v819_v23 = vsel %vm818_vm4, %v800_v6, %v804_v21 }
 0x17f   : > { %v821_v20 = vsel %vm820_vm5, %v801_v13, %v805_v47  ;;  %v823_v32 = vsel %vm822_vm6, %v815_v36, %v806_v54  ;;  %v2014_v9 = vpop.eup %2013  ;;  %v825_v29 = vsel %vm824_vm7, %v817_v27, %v807_v55  ;;  %vm826_vm8 = vcmp.lt.s32.totalorder %v819_v23, %v808_v0 }
 0x180   : > { %vm828_vm9 = vcmp.lt.s32.totalorder %v821_v20, %v809_v15  ;;  %vm830_vm10 = vcmp.lt.s32.totalorder %v823_v32, %v810_v16  ;;  %v2016_v63 = vpop.eup %2015  ;;  %v1277_v57 = vadd.f32 %v2004_v61, %v1276_v25  ;;  %v827_v58 = vsel %vm826_vm8, %v819_v23, %v808_v0 }
 0x181   : > { %v829_v4 = vsel %vm828_vm9, %v821_v20, %v809_v15  ;;  %v831_v14 = vsel %vm830_vm10, %v823_v32, %v810_v16  ;;  %v2018_v19 = vpop.eup %2017  ;;  %vm832_vm11 = vcmp.lt.s32.totalorder %v825_v29, %v811_v31  ;;  %vm834_vm12 = vcmp.lt.s32.totalorder %v827_v58, %v812_v1 }
 0x182   : > { %vm836_vm13 = vcmp.lt.s32.totalorder %v829_v4, %v813_v17  ;;  %v916_v50 = vmax.f32 %v912_v53, %v2824_v35  ;;  %v1278_v6 = vadd.f32 %v2006_v34, %v1277_v57  ;;  %v833_v13 = vsel %vm832_vm11, %v825_v29, %v811_v31 }
 0x183   : > { %v835_v36 = vsel %vm834_vm12, %v827_v58, %v812_v1  ;;  %v837_v21 = vsel %vm836_vm13, %v829_v4, %v813_v17  ;;  %vm838_vm14 = vcmp.lt.s32.totalorder %v831_v14, %v833_v13  ;;  %vm291_vm0 = vcmask 7168  }
 0x184   : > { %vm840_vm15 = vcmp.lt.s32.totalorder %v835_v36, %v837_v21  ;;  %v919_v55 = vmax.f32 %v916_v50, %v917_v7  ;;  %v1279_v53 = vadd.f32 %v2008_v45, %v1278_v6  ;;  %v839_v61 = vsel %vm838_vm14, %v831_v14, %v833_v13 }
 0x185   : > { %v841_v1 = vsel %vm840_vm15, %v835_v36, %v837_v21  ;;  %v2218_v20 = vmov 0.0   ;;  %2019 = vpow2.f32 %v2684_v37  ;;  %vm324_vm2 = vcmask 0   ;;  %v3616_v21 = vld [vmem:[#allocation40_spill] sm:$0xff] }
 0x186   : > { %323 = vst [vmem:[%s2835_s26 + $0x100] sm:$0x1] %v2218_v20  ;;  %vm842_vm1 = vcmp.lt.s32.totalorder %v839_v61, %v841_v1  ;;  %v920_v23 = vmax.f32 %v918_v5, %v919_v55  ;;  %292 = vst.msk [vmem:[%s2835_s26 + $0x8] sm:$0xff] %vm291_vm0, %v2218_v20  ;;  %v1280_v5 = vadd.f32 %v2010_v26, %v1279_v53  ;;  %2021 = vpow2.f32 %v2686_v38  ;;  %v3617_v55 = vld [vmem:[#allocation21_spill] sm:$0xff] }
 0x187   : > { %294 = vst.msk [vmem:[%s2835_s26 + $0x18] sm:$0xff] %vm291_vm0, %v2218_v20  ;;  %296 = vst.msk [vmem:[%s2835_s26 + $0x28] sm:$0xff] %vm291_vm0, %v2218_v20  ;;  %v843_v7 = vsel %vm842_vm1, %v839_v61, %v841_v1  ;;  %v3618_v1 = vld [vmem:[#allocation22_spill] sm:$0xff] }
 0x188   : > { %298 = vst.msk [vmem:[%s2835_s26 + $0x38] sm:$0xff] %vm291_vm0, %v2218_v20  ;;  %300 = vst.msk [vmem:[%s2835_s26 + $0x48] sm:$0xff] %vm291_vm0, %v2218_v20  ;;  %v844_v25 = vrot.slane %v843_v7, 4  ;;  %v921_v27 = vrot.slane %v920_v23, 4  ;;  %v1281_v29 = vadd.f32 %v2012_v51, %v1280_v5  ;;  %v3619_v5 = vld [vmem:[#allocation23_spill] sm:$0xff] }
 0x189   : > { %302 = vst.msk [vmem:[%s2835_s26 + $0x58] sm:$0xff] %vm291_vm0, %v2218_v20  ;;  %304 = vst.msk [vmem:[%s2835_s26 + $0x68] sm:$0xff] %vm291_vm0, %v2218_v20 }
 0x18a   : > { %306 = vst.msk [vmem:[%s2835_s26 + $0x78] sm:$0xff] %vm291_vm0, %v2218_v20  ;;  %308 = vst.msk [vmem:[%s2835_s26 + $0x88] sm:$0xff] %vm291_vm0, %v2218_v20  ;;  %vm845_vm3 = vcmp.lt.s32.totalorder %v843_v7, %v844_v25  ;;  %v922_v31 = vmax.f32 %v920_v23, %v921_v27  ;;  %v1282_v32 = vadd.f32 %v2014_v9, %v1281_v29  ;;  %v3621_v29 = vld [vmem:[#allocation25_spill] sm:$0xff] }
 0x18b   : > { %310 = vst.msk [vmem:[%s2835_s26 + $0x98] sm:$0xff] %vm291_vm0, %v2218_v20  ;;  %312 = vst.msk [vmem:[%s2835_s26 + $0xa8] sm:$0xff] %vm291_vm0, %v2218_v20  ;;  %v846_v34 = vsel %vm845_vm3, %v843_v7, %v844_v25  ;;  %v3620_v25 = vld [vmem:[#allocation24_spill] sm:$0xff] }
 0x18c   : > { %314 = vst.msk [vmem:[%s2835_s26 + $0xb8] sm:$0xff] %vm291_vm0, %v2218_v20  ;;  %316 = vst.msk [vmem:[%s2835_s26 + $0xc8] sm:$0xff] %vm291_vm0, %v2218_v20  ;;  %v847_v37 = vrot.slane %v846_v34, 2  ;;  %v923_v47 = vrot.slane %v922_v31, 2  ;;  %v1283_v60 = vadd.f32 %v2016_v63, %v1282_v32 }
 0x18d   : > { %318 = vst.msk [vmem:[%s2835_s26 + $0xd8] sm:$0xff] %vm291_vm0, %v2218_v20  ;;  %320 = vst.msk [vmem:[%s2835_s26 + $0xe8] sm:$0xff] %vm291_vm0, %v2218_v20 }
 0x18e   : > { %322 = vst.msk [vmem:[%s2835_s26 + $0xf8] sm:$0xff] %vm291_vm0, %v2218_v20  ;;  %vm848_vm4 = vcmp.lt.s32.totalorder %v846_v34, %v847_v37  ;;  %v924_v54 = vmax.f32 %v922_v31, %v923_v47  ;;  %v1284_v0 = vadd.f32 %v2018_v19, %v1283_v60  ;;  %v3623_v60 = vld [vmem:[#allocation28_spill] sm:$0xff] }
 0x18f   : > { %325 = vst.msk [vmem:[%s2835_s26 + $0x108] sm:$0x1] %vm324_vm2, %v2218_v20  ;;  %v849_v15 = vsel %vm848_vm4, %v846_v34, %v847_v37  ;;  %v2020_v26 = vpop.eup %2019  ;;  %v3622_v34 = vld [vmem:[#allocation27_spill] sm:$0xff] }
 0x190   : > { %v850_v16 = vrot.slane %v849_v15, 1  ;;  %v925_v10 = vrot.slane %v924_v54, 1  ;;  %v1285_v17 = vadd.f32 %v2020_v26, %v1284_v0  ;;  %v2022_v45 = vpop.eup %2021  ;;  %v3624_v0 = vld [vmem:[#allocation29_spill] sm:$0xff] }
 0x192   : > { %vm851_vm5 = vcmp.lt.s32.totalorder %v849_v15, %v850_v16  ;;  %v1286_v38 = vadd.f32 %v2022_v45, %v1285_v17  ;;  %v2876_v51 = vmax.f32 %v924_v54, %v925_v10  ;;  %v3626_v17 = vld [vmem:[#allocation31_spill] sm:$0xff] }
 0x193   : > { %v2874_v8 = vsel %vm851_vm5, %v849_v15, %v850_v16  ;;  %v3625_v16 = vld [vmem:[#allocation30_spill] sm:$0xff] }
 0x194   : > { %3612 = vst [vmem:[#allocation42_spill] sm:$0xff] %v2874_v8  ;;  %3613 = vst [vmem:[#allocation43_spill] sm:$0xff] %v2876_v51  ;;  %vm855_vm6 = vcmp.eq.s32.totalorder %v2605_v24, %v2874_v8  ;;  %vm859_vm7 = vcmp.eq.s32.totalorder %v2617_v28, %v2874_v8  ;;  %v1287_v9 = vrot.slane %v1286_v38, 4  ;;  %vm863_vm8 = vcmp.eq.s32.totalorder %v2631_v33, %v2874_v8 }
 0x195   : > { %vm867_vm9 = vcmp.eq.s32.totalorder %v2649_v40, %v2874_v8  ;;  %v871_v63 = vsel %vm855_vm6, -inf, %v2516_v52  ;;  %v875_v57 = vsel %vm859_vm7, -inf, %v2541_v59  ;;  %v879_v58 = vsel %vm863_vm8, -inf, %v2566_v3 }
 0x196   : > { %v1288_v4 = vadd.f32 %v1287_v9, %v1286_v38  ;;  %v2890_v14 = vsel %vm867_vm9, -inf, %v2589_v11  ;;  %v887_v19 = vmax.f32 %v871_v63, %v875_v57  ;;  %vm927_vm10 = vcmp.eq.f32.partialorder %v2688_v39, %v2876_v51  ;;  %v3627_v38 = vld [vmem:[#allocation32_spill] sm:$0xff] }
 0x197   : > { %3614 = vst [vmem:[#allocation44_spill] sm:$0xff] %v2890_v14  ;;  %vm928_vm11 = vcmp.eq.f32.partialorder %v2676_v62, %v2876_v51  ;;  %vm929_vm12 = vcmp.eq.f32.partialorder %v2700_v42, %v2876_v51  ;;  %vm930_vm13 = vcmp.eq.f32.partialorder %v2692_v41, %v2876_v51  ;;  %vm931_vm14 = vcmp.eq.f32.partialorder %v2718_v46, %v2876_v51  ;;  %v3639_v14 = vld [vmem:[#allocation18_spill] sm:$0xff] }
 0x198   : > { %v1289_v50 = vrot.slane %v1288_v4, 2  ;;  %v2902_v6 = vmax.f32 %v887_v19, %v879_v58  ;;  %vm932_vm15 = vcmp.eq.f32.partialorder %v2708_v43, %v2876_v51  ;;  %vm933_vm0 = vcmp.eq.f32.partialorder %v2734_v56, %v2876_v51 }
 0x199   : > { %vm934_vm1 = vcmp.eq.f32.partialorder %v2726_v48, %v2876_v51  ;;  %vm935_vm2 = vcmp.eq.f32.partialorder %v2755_v12, %v2876_v51  ;;  %vm936_vm3 = vcmp.eq.f32.partialorder %v2744_v2, %v2876_v51  ;;  %vm937_vm4 = vcmp.eq.f32.partialorder %v2775_v49, %v2876_v51 }
 0x19a   : > { %3615 = vst [vmem:[#allocation45_spill] sm:$0xff] %v2902_v6  ;;  %v1290_v13 = vadd.f32 %v1289_v50, %v1288_v4  ;;  %vm938_vm5 = vcmp.eq.f32.partialorder %v2766_v18, %v2876_v51  ;;  %vm939_vm6 = vcmp.eq.f32.partialorder %v2797_v30, %v2876_v51  ;;  %vm940_vm7 = vcmp.eq.f32.partialorder %v2786_v22, %v2876_v51 }
 0x19b   : > { %vm941_vm8 = vcmp.eq.f32.partialorder %v2824_v35, %v2876_v51  ;;  %vm942_vm9 = vcmp.eq.f32.partialorder %v3616_v21, %v2876_v51  ;;  %v943_v53 = vsel %vm927_vm10, %v3617_v55, 128  ;;  %v944_v20 = vsel %vm928_vm11, %v3618_v1, 128  ;;  %v3640_v21 = vld [vmem:[#allocation20_spill] sm:$0xff] }
 0x19c   : > { %v1291_v61 = vrot.slane %v1290_v13, 1  ;;  %v945_v23 = vsel %vm929_vm12, %v2605_v24, 128  ;;  %v946_v7 = vsel %vm930_vm13, %v3619_v5, 128  ;;  %v947_v27 = vsel %vm931_vm14, %v3620_v25, 128 }
 0x19d   : > { %v948_v31 = vsel %vm932_vm15, %v3621_v29, 128  ;;  %v949_v32 = vsel %vm933_vm0, %v2617_v28, 128  ;;  %v950_v37 = vsel %vm934_vm1, %v3622_v34, 128  ;;  %v951_v54 = vsel %vm935_vm2, %v3623_v60, 128 }
 0x19e   : > { %v1292_v47 = vadd.f32 %v1291_v61, %v1290_v13  ;;  %v952_v15 = vsel %vm936_vm3, %v3624_v0, 128  ;;  %v953_v26 = vsel %vm937_vm4, %v2631_v33, 128  ;;  %vm856_vm10 = vcmp.eq.s32.totalorder %v3619_v5, %v2874_v8 }
 0x19f   : > { %v954_v10 = vsel %vm938_vm5, %v3625_v16, 128  ;;  %v955_v45 = vsel %vm939_vm6, %v3626_v17, 128  ;;  %v956_v9 = vsel %vm940_vm7, %v3627_v38, 128  ;;  %v957_v63 = vsel %vm941_vm8, %v2649_v40, 128 }
 0x1a0   : > { %2023 = vlog2.f32 %v1292_v47  ;;  %vm860_vm11 = vcmp.eq.s32.totalorder %v3622_v34, %v2874_v8  ;;  %v958_v57 = vsel %vm942_vm9, %v2658_v44, 128  ;;  %vm959_vm12 = vcmp.lt.s32.totalorder %v943_v53, %v947_v27 }
 0x1a1   : > { %vm961_vm13 = vcmp.lt.s32.totalorder %v944_v20, %v948_v31  ;;  %vm864_vm14 = vcmp.eq.s32.totalorder %v3625_v16, %v2874_v8  ;;  %v960_v58 = vsel %vm959_vm12, %v943_v53, %v947_v27  ;;  %vm963_vm15 = vcmp.lt.s32.totalorder %v945_v23, %v949_v32 }
 0x1a2   : > { %v962_v4 = vsel %vm961_vm13, %v944_v20, %v948_v31  ;;  %vm965_vm0 = vcmp.lt.s32.totalorder %v946_v7, %v950_v37  ;;  %vm868_vm1 = vcmp.eq.s32.totalorder %v2658_v44, %v2874_v8  ;;  %v964_v19 = vsel %vm963_vm15, %v945_v23, %v949_v32 }
 0x1a3   : > { %v966_v50 = vsel %vm965_vm0, %v946_v7, %v950_v37  ;;  %vm967_vm2 = vcmp.lt.s32.totalorder %v960_v58, %v951_v54  ;;  %vm969_vm3 = vcmp.lt.s32.totalorder %v962_v4, %v952_v15  ;;  %vm971_vm4 = vcmp.lt.s32.totalorder %v964_v19, %v953_v26  ;;  %v3629_v37 = vld [vmem:[#allocation9_spill] sm:$0xff] }
 0x1a4   : > { %v968_v13 = vsel %vm967_vm2, %v960_v58, %v951_v54  ;;  %v970_v61 = vsel %vm969_vm3, %v962_v4, %v952_v15  ;;  %vm973_vm5 = vcmp.lt.s32.totalorder %v966_v50, %v954_v10  ;;  %v972_v47 = vsel %vm971_vm4, %v964_v19, %v953_v26  ;;  %v3630_v15 = vld [vmem:[#allocation11_spill] sm:$0xff]  ;;  %v3633_v4 = vld [vmem:[#allocation14_spill] sm:$0xff] }
 0x1a5   : > { %v974_v36 = vsel %vm973_vm5, %v966_v50, %v954_v10  ;;  %vm975_vm6 = vcmp.lt.s32.totalorder %v968_v13, %v955_v45  ;;  %vm977_vm7 = vcmp.lt.s32.totalorder %v970_v61, %v956_v9  ;;  %vm979_vm8 = vcmp.lt.s32.totalorder %v972_v47, %v957_v63  ;;  %v3631_v10 = vld [vmem:[#allocation13_spill] sm:$0xff]  ;;  %v3634_v50 = vld [vmem:[#allocation16_spill] sm:$0xff] }
 0x1a6   : > { %v976_v51 = vsel %vm975_vm6, %v968_v13, %v955_v45  ;;  %v978_v53 = vsel %vm977_vm7, %v970_v61, %v956_v9  ;;  %vm981_vm9 = vcmp.lt.s32.totalorder %v974_v36, %v958_v57  ;;  %v980_v20 = vsel %vm979_vm8, %v972_v47, %v957_v63  ;;  %v3635_v61 = vld [vmem:[#allocation15_spill] sm:$0xff] }
 0x1a7   : > { %v982_v27 = vsel %vm981_vm9, %v974_v36, %v958_v57  ;;  %vm983_vm12 = vcmp.lt.s32.totalorder %v976_v51, %v978_v53  ;;  %vm853_vm13 = vcmp.eq.s32.totalorder %v3617_v55, %v2874_v8  ;;  %vm854_vm0 = vcmp.eq.s32.totalorder %v3618_v1, %v2874_v8  ;;  %v3632_v57 = vld [vmem:[#allocation12_spill] sm:$0xff] }
 0x1a8   : > { %v984_v23 = vsel %vm983_vm12, %v976_v51, %v978_v53  ;;  %vm985_vm15 = vcmp.lt.s32.totalorder %v980_v20, %v982_v27  ;;  %vm857_vm2 = vcmp.eq.s32.totalorder %v3620_v25, %v2874_v8  ;;  %vm858_vm3 = vcmp.eq.s32.totalorder %v3621_v29, %v2874_v8  ;;  %v3628_v51 = vld [vmem:[#allocation10_spill] sm:$0xff]  ;;  %v3636_v53 = vld [vmem:[#allocation17_spill] sm:$0xff] }
 0x1a9   : > { %v986_v7 = vsel %vm985_vm15, %v980_v20, %v982_v27  ;;  %vm861_vm4 = vcmp.eq.s32.totalorder %v3623_v60, %v2874_v8  ;;  %vm862_vm5 = vcmp.eq.s32.totalorder %v3624_v0, %v2874_v8  ;;  %vm865_vm7 = vcmp.eq.s32.totalorder %v3626_v17, %v2874_v8  ;;  %v3637_v27 = vld [vmem:[#allocation19_spill] sm:$0xff] }
 0x1aa   : > { %vm987_vm6 = vcmp.lt.s32.totalorder %v984_v23, %v986_v7  ;;  %vm866_vm8 = vcmp.eq.s32.totalorder %v3627_v38, %v2874_v8  ;;  %v869_v36 = vsel %vm853_vm13, -inf, %v3628_v51  ;;  %v2024_v31 = vpop.eup %2023  ;;  %v870_v54 = vsel %vm854_vm0, -inf, %v3629_v37 }
 0x1ab   : > { %v988_v32 = vsel %vm987_vm6, %v984_v23, %v986_v7  ;;  %v872_v26 = vsel %vm856_vm10, -inf, %v3630_v15  ;;  %v873_v45 = vsel %vm857_vm2, -inf, %v3631_v10  ;;  %v1294_v9 = vmul.f32 0.6931472, %v2024_v31  ;;  %v3638_v7 = vld [vmem:[#allocation26_spill] sm:$0xff] }
 0x1ac   : > { %v989_v63 = vrot.slane %v988_v32, 4  ;;  %v874_v58 = vsel %vm858_vm3, -inf, %v3632_v57  ;;  %v876_v19 = vsel %vm860_vm11, -inf, %v3633_v4  ;;  %v877_v13 = vsel %vm861_vm4, -inf, %v3634_v50 }
 0x1ad   : > { %v878_v47 = vsel %vm862_vm5, -inf, %v3635_v61  ;;  %v880_v20 = vsel %vm864_vm14, -inf, %v3636_v53  ;;  %v3035_v23 = vsel %vm865_vm7, -inf, %v3637_v27  ;;  %v3038_v31 = vadd.f32 %v1294_v9, %v3638_v7 }
 0x1ae   : > { %vm990_vm10 = vcmp.lt.s32.totalorder %v988_v32, %v989_v63  ;;  %v3044_v6 = vsel %vm866_vm8, -inf, %v3639_v14  ;;  %v3050_v35 = vsel %vm868_vm1, -inf, %v3640_v21  ;;  %v885_v30 = vmax.f32 %v869_v36, %v873_v45 }
 0x1af   : > { %v991_v22 = vsel %vm990_vm10, %v988_v32, %v989_v63  ;;  %v886_v18 = vmax.f32 %v870_v54, %v874_v58  ;;  %v888_v49 = vmax.f32 %v872_v26, %v876_v19  ;;  %v1313_v9 = vsub.f32 %v3629_v37, %v3038_v31 }
 0x1b0   : > { %v992_v2 = vrot.slane %v991_v22, 2  ;;  %v1315_v7 = vsub.f32 %v3630_v15, %v3038_v31  ;;  %v1312_v12 = vsub.f32 %v3628_v51, %v3038_v31  ;;  %v1324_v54 = vsub.f32 %v3637_v27, %v3038_v31 }
 0x1b1   : > { %v1327_v26 = vsub.f32 %v3640_v21, %v3038_v31  ;;  %v1326_v45 = vsub.f32 %v2589_v11, %v3038_v31  ;;  %v892_v8 = vmax.f32 %v888_v49, %v880_v20 }
 0x1b2   : > { %vm993_vm11 = vcmp.lt.s32.totalorder %v991_v22, %v992_v2 }
 0x1b3   : > { %v994_v63 = vsel %vm993_vm11, %v991_v22, %v992_v2  ;;  %v889_v2 = vmax.f32 %v885_v30, %v877_v13  ;;  %v890_v22 = vmax.f32 %v886_v18, %v878_v47  ;;  %v896_v48 = vmax.f32 %v892_v8, %v3050_v35  ;;  %v3642_v8 = vld [vmem:[#allocation35_spill] sm:$0xff]  ;;  %v3649_v13 = vld [vmem:[#allocation40_spill] sm:$0xff] }
 0x1b4   : > { %v995_v36 = vrot.slane %v994_v63, 1 }
 0x1b5   : > { %v893_v19 = vmax.f32 %v889_v2, %v3035_v23  ;;  %v894_v32 = vmax.f32 %v890_v22, %v3044_v6  ;;  %v3643_v6 = vld [vmem:[#allocation34_spill] sm:$0xff]  ;;  %v3651_v2 = vld [vmem:[#allocation44_spill] sm:$0xff] }
 0x1b6   : > { %vm996_vm14 = vcmp.lt.s32.totalorder %v994_v63, %v995_v36 }
 0x1b7   : > { %v3084_v58 = vsel %vm996_vm14, %v994_v63, %v995_v36  ;;  %v897_v36 = vmax.f32 %v893_v19, %v894_v32  ;;  %v3650_v63 = vld [vmem:[#allocation45_spill] sm:$0xff] }
 0x1b8   : > { %vm998_vm1 = vcmp.eq.s32.totalorder %v3617_v55, %v3084_v58  ;;  %vm999_vm9 = vcmp.eq.s32.totalorder %v3618_v1, %v3084_v58  ;;  %vm1000_vm12 = vcmp.eq.s32.totalorder %v2605_v24, %v3084_v58  ;;  %vm1001_vm13 = vcmp.eq.s32.totalorder %v3619_v5, %v3084_v58  ;;  %v3644_v1 = vld [vmem:[#allocation37_spill] sm:$0xff] }
 0x1b9   : > { %vm1002_vm15 = vcmp.eq.s32.totalorder %v3620_v25, %v3084_v58  ;;  %vm1003_vm0 = vcmp.eq.s32.totalorder %v3621_v29, %v3084_v58  ;;  %vm1004_vm2 = vcmp.eq.s32.totalorder %v2617_v28, %v3084_v58  ;;  %vm1005_vm3 = vcmp.eq.s32.totalorder %v3622_v34, %v3084_v58  ;;  %v3646_v25 = vld [vmem:[#allocation39_spill] sm:$0xff]  ;;  %v3647_v34 = vld [vmem:[#allocation38_spill] sm:$0xff] }
 0x1ba   : > { %vm1006_vm4 = vcmp.eq.s32.totalorder %v3623_v60, %v3084_v58  ;;  %vm1007_vm5 = vcmp.eq.s32.totalorder %v3624_v0, %v3084_v58  ;;  %vm1008_vm6 = vcmp.eq.s32.totalorder %v2631_v33, %v3084_v58  ;;  %vm1009_vm7 = vcmp.eq.s32.totalorder %v3625_v16, %v3084_v58  ;;  %v3648_v0 = vld [vmem:[#allocation41_spill] sm:$0xff] }
 0x1bb   : > { %vm1010_vm8 = vcmp.eq.s32.totalorder %v3626_v17, %v3084_v58  ;;  %vm1011_vm10 = vcmp.eq.s32.totalorder %v3627_v38, %v3084_v58  ;;  %vm1012_vm11 = vcmp.eq.s32.totalorder %v2649_v40, %v3084_v58  ;;  %vm1013_vm14 = vcmp.eq.s32.totalorder %v2658_v44, %v3084_v58 }
 0x1bc   : > { %v1014_v49 = vsel %vm998_vm1, -inf, %v2688_v39  ;;  %v1015_v30 = vsel %vm999_vm9, -inf, %v2676_v62  ;;  %v1016_v35 = vsel %vm1000_vm12, -inf, %v2700_v42  ;;  %v1017_v18 = vsel %vm1001_vm13, -inf, %v2692_v41  ;;  %v3641_v42 = vld [vmem:[#allocation33_spill] sm:$0xff] }
 0x1bd   : > { %v1018_v39 = vsel %vm1002_vm15, -inf, %v2718_v46  ;;  %v1019_v62 = vsel %vm1003_vm0, -inf, %v2708_v43  ;;  %v1020_v24 = vsel %vm1004_vm2, -inf, %v2734_v56  ;;  %v1021_v41 = vsel %vm1005_vm3, -inf, %v3641_v42  ;;  %v3645_v56 = vld [vmem:[#allocation36_spill] sm:$0xff] }
 0x1be   : > { %v1022_v46 = vsel %vm1006_vm4, -inf, %v3642_v8  ;;  %v1023_v43 = vsel %vm1007_vm5, -inf, %v3643_v6  ;;  %v1024_v28 = vsel %vm1008_vm6, -inf, %v3644_v1  ;;  %v1025_v5 = vsel %vm1009_vm7, -inf, %v3645_v56 }
 0x1bf   : > { %v1026_v29 = vsel %vm1010_vm8, -inf, %v3646_v25  ;;  %v1027_v60 = vsel %vm1011_vm10, -inf, %v3647_v34  ;;  %v1028_v33 = vsel %vm1012_vm11, -inf, %v3648_v0  ;;  %v1029_v16 = vsel %vm1013_vm14, -inf, %v3649_v13 }
 0x1c0   : > { %v1030_v47 = vmax.f32 %v1014_v49, %v1018_v39  ;;  %v1031_v20 = vmax.f32 %v1015_v30, %v1019_v62  ;;  %v1032_v23 = vmax.f32 %v1016_v35, %v1020_v24  ;;  %v1033_v17 = vmax.f32 %v1017_v18, %v1021_v41 }
 0x1c1   : > { %v3652_v22 = vmax.f32 %v3650_v63, %v3651_v2  ;;  %vm1054_vm1 = vcmp.eq.s32.totalorder %v3617_v55, 2  ;;  %vm1053_vm9 = vcmp.eq.s32.totalorder %v3617_v55, 1  ;;  %vm1051_vm12 = vcmp.eq.s32.totalorder %v3617_v55, 0 }
 0x1c2   : > { %v1034_v42 = vmax.f32 %v1030_v47, %v1022_v46  ;;  %v1035_v8 = vmax.f32 %v1031_v20, %v1023_v43  ;;  %v1036_v6 = vmax.f32 %v1032_v23, %v1024_v28  ;;  %v1037_v1 = vmax.f32 %v1033_v17, %v1025_v5 }
 0x1c3   : > { %v898_v38 = vmax.f32 %v3652_v22, %v896_v48  ;;  %v3188_v40 = vpop.xlane.xlu0 %1066 }
 0x1c4   : > { %v1097_v44 = vsub.f32 %v3629_v37, %v3188_v40  ;;  %v1038_v25 = vmax.f32 %v1034_v42, %v1026_v29  ;;  %v1039_v49 = vmax.f32 %v1035_v8, %v1027_v60  ;;  %v1040_v30 = vmax.f32 %v1036_v6, %v1028_v33 }
 0x1c5   : > { %v899_v56 = vmax.f32 %v897_v36, %v898_v38  ;;  %v1041_v35 = vmax.f32 %v1037_v1, %v1029_v16  ;;  %v3653_v38 = vld [vmem:[#allocation42_spill] sm:$0xff] }
 0x1c6   : > { %v1114_v32 = vmul.f32 1.442695, %v1097_v44  ;;  %v1042_v19 = vmax.f32 %v1038_v25, %v1039_v49  ;;  %v1059_v42 = vcvt.s32.f32 %v3653_v38  ;;  %v3654_v1 = vld [vmem:[#allocation26_spill] sm:$0xff] }
 0x1c7   : > { %v900_v18 = vrot.slane %v899_v56, 4  ;;  %v3192_v39 = vpop.xlane.xlu0 %1064  ;;  %v3194_v48 = vpop.xlane.xlu1 %1070  ;;  %v1043_v62 = vmax.f32 %v1040_v30, %v1041_v35 }
 0x1c8   : > { %2025 = vpow2.f32 %v1114_v32  ;;  %v1096_v41 = vsub.f32 %v3628_v51, %v3192_v39  ;;  %v1099_v46 = vsub.f32 %v3630_v15, %v3194_v48 }
 0x1c9   : > { %v901_v24 = vmax.f32 %v899_v56, %v900_v18  ;;  %v3200_v43 = vmax.f32 %v1042_v19, %v1043_v62 }
 0x1ca   : > { %v1112_v5 = vmul.f32 1.442695, %v1096_v41  ;;  %v1118_v29 = vmul.f32 1.442695, %v1099_v46  ;;  %v3246_v46 = vld [vmem:[%s2506_s15 + $0x48] sm:$0xff] }
 0x1cb   : > { %v902_v28 = vrot.slane %v901_v24, 2  ;;  %v3202_v34 = vpop.xlane.xlu1 %1068 }
 0x1cc   : > { %2027 = vpow2.f32 %v1112_v5  ;;  %v1098_v0 = vsub.f32 %v2516_v52, %v3202_v34  ;;  %v3206_v33 = vpop.xlane.xlu0 %1072 }
 0x1cd   : > { %v903_v60 = vmax.f32 %v901_v24, %v902_v28  ;;  %2029 = vpow2.f32 %v1118_v29  ;;  %v1100_v13 = vsub.f32 %v3631_v10, %v3206_v33 }
 0x1ce   : > { %v1116_v47 = vmul.f32 1.442695, %v1098_v0 }
 0x1cf   : > { %v904_v16 = vrot.slane %v903_v60, 1  ;;  %v1120_v20 = vmul.f32 1.442695, %v1100_v13  ;;  %v3212_v23 = vpop.xlane.xlu1 %1074 }
 0x1d0   : > { %2031 = vpow2.f32 %v1116_v47  ;;  %v1101_v36 = vsub.f32 %v3632_v57, %v3212_v23  ;;  %v3217_v63 = vpop.xlane.xlu0 %1076  ;;  %v3257_v47 = vld [vmem:[%s2506_s15 + $0x58] sm:$0xff] }
 0x1d1   : > { %v905_v17 = vmax.f32 %v903_v60, %v904_v16  ;;  %v1102_v2 = vsub.f32 %v2541_v59, %v3217_v63  ;;  %2033 = vpow2.f32 %v1120_v20 }
 0x1d2   : > { %v2026_v8 = vpop.eup %2025  ;;  %v1122_v6 = vmul.f32 1.442695, %v1101_v36 }
 0x1d3   : > { %v1060_v22 = vsel %vm1054_vm1, %v905_v17, 0.0  ;;  %v1124_v44 = vmul.f32 1.442695, %v1102_v2  ;;  %v3228_v25 = vpop.xlane.xlu1 %1078  ;;  %1146 = vadd.xlane.f32.xlu1 %v2026_v8 }
 0x1d4   : > { %v1061_v56 = vsel %vm1053_vm9, %v3654_v1, %v1060_v22  ;;  %2035 = vpow2.f32 %v1122_v6  ;;  %v1103_v30 = vsub.f32 %v3633_v4, %v3228_v25  ;;  %v3234_v35 = vpop.xlane.xlu0 %1080  ;;  %v3268_v6 = vld [vmem:[%s2506_s15 + $0x68] sm:$0xff] }
 0x1d5   : > { %v1062_v49 = vsel %vm1051_vm12, %v1059_v42, %v1061_v56  ;;  %v1104_v18 = vsub.f32 %v3634_v50, %v3234_v35  ;;  %2037 = vpow2.f32 %v1124_v44  ;;  %v1045_v44 = vrot.slane %v3200_v43, 4 }
 0x1d6   : > { %1063 = vst [vmem:[%s3238_s6] sm:$0xff] %v1062_v49  ;;  %v2028_v32 = vpop.eup %2027  ;;  %v1126_v19 = vmul.f32 1.442695, %v1103_v30  ;;  %v3276_v30 = vld [vmem:[%s2506_s15 + $0x70] sm:$0xff] }
 0x1d7   : > { %v2030_v62 = vpop.eup %2029  ;;  %v1128_v24 = vmul.f32 1.442695, %v1104_v18  ;;  %v3243_v41 = vpop.xlane.xlu1 %1082  ;;  %1144 = vadd.xlane.f32.xlu0 %v2028_v32 }
 0x1d8   : > { %2039 = vpow2.f32 %v1126_v19  ;;  %v1105_v28 = vsub.f32 %v3246_v46, %v3243_v41  ;;  %1150 = vadd.xlane.f32.xlu1 %v2030_v62  ;;  %v3250_v5 = vpop.xlane.xlu0 %1084 }
 0x1d9   : > { %v1106_v29 = vsub.f32 %v2566_v3, %v3250_v5  ;;  %2041 = vpow2.f32 %v1128_v24 }
 0x1da   : > { %v2032_v60 = vpop.eup %2031  ;;  %v1130_v0 = vmul.f32 1.442695, %v1105_v28  ;;  %v3283_v28 = vld [vmem:[%s2506_s15 + $0x78] sm:$0xff]  ;;  %s3315_s15 = scalar_lea.sflag [#allocation5], %s1370_s8 }
 0x1db   : > { %v1132_v13 = vmul.f32 1.442695, %v1106_v29  ;;  %v3254_v16 = vpop.xlane.xlu1 %1086  ;;  %1148 = vadd.xlane.f32.xlu0 %v2032_v60  ;;  %v2034_v36 = vpop.eup %2033  ;;  %v1046_v60 = vmax.f32 %v3200_v43, %v1045_v44 }
 0x1dc   : > { %2043 = vpow2.f32 %v1130_v0  ;;  %v1107_v20 = vsub.f32 %v3257_v47, %v3254_v16  ;;  %v3261_v17 = vpop.xlane.xlu0 %1088 }
 0x1dd   : > { %v1108_v2 = vsub.f32 %v3637_v27, %v3261_v17  ;;  %2045 = vpow2.f32 %v1132_v13 }
 0x1de   : > { %v2036_v22 = vpop.eup %2035  ;;  %v1134_v38 = vmul.f32 1.442695, %v1107_v20 }
 0x1df   : > { %v1136_v42 = vmul.f32 1.442695, %v1108_v2  ;;  %v3265_v8 = vpop.xlane.xlu1 %1090  ;;  %1154 = vadd.xlane.f32.xlu1 %v2036_v22  ;;  %1152 = vadd.xlane.f32.xlu0 %v2034_v36  ;;  %v2038_v49 = vpop.eup %2037  ;;  %v1047_v36 = vrot.slane %v1046_v60, 2 }
 0x1e0   : > { %2047 = vpow2.f32 %v1134_v38  ;;  %v1109_v1 = vsub.f32 %v3268_v6, %v3265_v8  ;;  %v3272_v56 = vpop.xlane.xlu0 %1092 }
 0x1e1   : > { %v1110_v18 = vsub.f32 %v3276_v30, %v3272_v56  ;;  %2049 = vpow2.f32 %v1136_v42  ;;  %v1048_v38 = vmax.f32 %v1046_v60, %v1047_v36 }
 0x1e2   : > { %v2040_v32 = vpop.eup %2039  ;;  %v1138_v19 = vmul.f32 1.442695, %v1109_v1 }
 0x1e3   : > { %v1140_v62 = vmul.f32 1.442695, %v1110_v18  ;;  %1158 = vadd.xlane.f32.xlu1 %v2040_v32  ;;  %v3280_v24 = vpop.xlane.xlu1 %1094  ;;  %1156 = vadd.xlane.f32.xlu0 %v2038_v49  ;;  %v2042_v0 = vpop.eup %2041  ;;  %v1049_v43 = vrot.slane %v1048_v38, 1  ;;  %v1052_v32 = vcvt.s32.f32 %v3084_v58 }
 0x1e4   : > { %2051 = vpow2.f32 %v1138_v19  ;;  %v1111_v29 = vsub.f32 %v3283_v28, %v3280_v24 }
 0x1e5   : > { %2053 = vpow2.f32 %v1140_v62  ;;  %v1050_v18 = vmax.f32 %v1048_v38, %v1049_v43  ;;  %v3655_v62 = vld [vmem:[#allocation43_spill] sm:$0xff] }
 0x1e6   : > { %v2044_v13 = vpop.eup %2043  ;;  %v1142_v20 = vmul.f32 1.442695, %v1111_v29 }
 0x1e7   : > { %1162 = vadd.xlane.f32.xlu1 %v2044_v13  ;;  %1160 = vadd.xlane.f32.xlu0 %v2042_v0  ;;  %v2046_v2 = vpop.eup %2045  ;;  %v1055_v19 = vsel %vm1054_vm1, %v1050_v18, 0.0 }
 0x1e8   : > { %2055 = vpow2.f32 %v1142_v20  ;;  %v1056_v29 = vsel %vm1053_vm9, %v3655_v62, %v1055_v19 }
 0x1e9   : > { %v1057_v60 = vsel %vm1051_vm12, %v1052_v32, %v1056_v29 }
 0x1ea   : > { %v2048_v22 = vpop.eup %2047  ;;  %1058 = vst [vmem:[%s250_s7] sm:$0xff] %v1057_v60  ;;  %s2100_s7 = scalar_lea.vmem %s2099_s12, 256 }
 0x1eb   : > { %1166 = vadd.xlane.f32.xlu1 %v2048_v22  ;;  %1164 = vadd.xlane.f32.xlu0 %v2046_v2  ;;  %v2050_v42 = vpop.eup %2049  ;;  %p2102_p1 = scmp.lt.s32.totalorder %s2100_s7, %s2094_s23 }
 0x1ed   : > { %p2103_p2 = por %p2102_p1, %p2101_p0 }
 0x1ee   : > { %v2052_v1 = vpop.eup %2051 }
 0x1ef   : > { %1170 = vadd.xlane.f32.xlu1 %v2052_v1  ;;  %1168 = vadd.xlane.f32.xlu0 %v2050_v42  ;;  %v2054_v44 = vpop.eup %2053  ;;  %p2104_p3 = pnand %p2103_p2, %p2097_p13 }
 0x1f2   : > { %v2056_v49 = vpop.eup %2055 }
 0x1f3   : > { %1174 = vadd.xlane.f32.xlu1 %v2056_v49  ;;  %1172 = vadd.xlane.f32.xlu0 %v2054_v44 }
 0x1f4   : > { %2107 = shalt.err (!%p2104_p3)
}
 0x1f5   : > { %s2108_s8 = scalar_lea.hbm %s3306_s14, 128  ;;  %s2112_s25 = scalar_lea.hbm %s3507_s4, 256 }
 0x1f6   : > { %p2109_p4 = scmp.ne.s32.totalorder %s3306_s14, %s2108_s8  ;;  %p2113_p9 = scmp.lt.u32.totalorder %s3306_s14, %s3507_s4 }
 0x1f7   : > { %p2114_p10 = scmp.lt.u32.totalorder %s2112_s25, %s2108_s8  ;;  %p2116_p12 = scmp.lt.u32.totalorder %s2108_s8, %s3306_s14 }
 0x1f8   : > { %p2110_p7 = pnand %p2109_p4, %p2294_p5 }
 0x1f9   : > { %p2115_p11 = por %p2114_p10, %p2113_p9 }
 0x1fa   : > { %p2111_p8 = pneg %p2110_p7 }
 0x1fb   : > { %p2117_p13 = por %p2116_p12, %p2115_p11 }
 0x1fd   : > { %p2118_p0 = pnand %p2117_p13, %p2111_p8 }
 0x1ff   : > { %2121 = shalt.err (!%p2118_p0)
}
 0x200   : > { %1940 = dma.vmem_to_hbm [thread:$0]  (%p2294_p5), %s3308_s16, 128, %s3306_s14, %s3315_s15  }
 0x201   : > { %s1665_s23 = sshll.u32 %s2275_s22, 11  ;;  %s1361_s17 = scalar_lea.sflag [#allocation3], %s2498_s13 }
 0x202   : > { %s3343_s8 = scalar_lea.hbm %s3505_s2, %s1665_s23  ;;  %s2122_s25 = scalar_lea.vmem %s3300_s9, 2048 }
 0x203   : > { %p2123_p1 = scmp.ne.s32.totalorder %s3300_s9, %s2122_s25  ;;  %s2220_s11 = smov [#allocation2]  }
 0x204   : > { %s2126_s12 = sshll.u32 %s2220_s11, 4  ;;  %s2127_s12 = int_to_ptr.vmem [resolvable:$false] %s2126_s12 }
 0x205   : > { %p2124_p2 = pnand %p2123_p1, %p2294_p5  ;;  %s2128_s0 = scalar_lea.vmem %s2127_s12, 4096 }
 0x206   : > { %p2129_p4 = scmp.lt.s32.totalorder %s3300_s9, %s2127_s12  ;;  %p2130_p7 = scmp.lt.s32.totalorder %s2128_s0, %s2122_s25 }
 0x207   : > { %p2125_p3 = pneg %p2124_p2 }
 0x208   : > { %p2131_p8 = por %p2130_p7, %p2129_p4 }
 0x20a   : > { %p2132_p9 = pnand %p2131_p8, %p2125_p3 }
 0x20c   : > { %2135 = shalt.err (!%p2132_p9)
}
 0x20d   : > { %s2136_s22 = scalar_lea.hbm %s3343_s8, 2048  ;;  %s2140_s23 = scalar_lea.hbm %s3505_s2, 4096 }
 0x20e   : > { %p2137_p10 = scmp.ne.s32.totalorder %s3343_s8, %s2136_s22  ;;  %p2141_p13 = scmp.lt.u32.totalorder %s3343_s8, %s3505_s2 }
 0x20f   : > { %p2142_p0 = scmp.lt.u32.totalorder %s2140_s23, %s2136_s22  ;;  %p2144_p2 = scmp.lt.u32.totalorder %s2136_s22, %s3343_s8 }
 0x210   : > { %p2138_p11 = pnand %p2137_p10, %p2294_p5 }
 0x211   : > { %p2143_p1 = por %p2142_p0, %p2141_p13 }
 0x212   : > { %p2139_p12 = pneg %p2138_p11 }
 0x213   : > { %p2145_p3 = por %p2144_p2, %p2143_p1 }
 0x215   : > { %p2146_p4 = pnand %p2145_p3, %p2139_p12 }
 0x217   : > { %2149 = shalt.err (!%p2146_p4)
}
 0x218   : > { %s2221_s0 = smov 128   ;;  %s2222_s25 = smov 8  }
 0x219   : > { %1939 = dma.vmem_to_hbm [thread:$0]  (%p2294_p5), %s3300_s9, 2048, %s3343_s8, %s1361_s17, %s2221_s0, %s2221_s0, %s2222_s25  }
 0x21a   : > { %s1421_s11 = sshll.u32 %s3238_s6, 4  ;;  %s2223_s22 = smov [#allocation6]   ;;  %s1422_s11 = int_to_ptr.vmem [resolvable:$true] %s1421_s11 }
 0x21b   : > { %s2150_s12 = scalar_lea.vmem %s1422_s11, 128  ;;  %s2154_s14 = sshll.u32 %s2223_s22, 4  ;;  %s2155_s14 = int_to_ptr.vmem [resolvable:$false] %s2154_s14 }
 0x21c   : > { %p2151_p7 = scmp.ne.s32.totalorder %s1422_s11, %s2150_s12  ;;  %s2156_s16 = scalar_lea.vmem %s2155_s14, 256 }
 0x21d   : > { %p2157_p10 = scmp.lt.s32.totalorder %s1422_s11, %s2155_s14  ;;  %p2158_p11 = scmp.lt.s32.totalorder %s2156_s16, %s2150_s12 }
 0x21e   : > { %p2152_p8 = pnand %p2151_p7, %p2294_p5 }
 0x21f   : > { %p2159_p12 = por %p2158_p11, %p2157_p10 }
 0x220   : > { %p2153_p9 = pneg %p2152_p8 }
 0x222   : > { %p2160_p13 = pnand %p2159_p12, %p2153_p9 }
 0x224   : > { %2163 = shalt.err (!%p2160_p13)
}
 0x225   : > { %s2164_s13 = scalar_lea.hbm %s3313_s30, 128  ;;  %s2168_s8 = scalar_lea.hbm %s3508_s5, 256 }
 0x226   : > { %p2165_p0 = scmp.ne.s32.totalorder %s3313_s30, %s2164_s13  ;;  %p2169_p3 = scmp.lt.u32.totalorder %s3313_s30, %s3508_s5 }
 0x227   : > { %p2170_p4 = scmp.lt.u32.totalorder %s2168_s8, %s2164_s13  ;;  %p2172_p8 = scmp.lt.u32.totalorder %s2164_s13, %s3313_s30 }
 0x228   : > { %p2166_p1 = pnand %p2165_p0, %p2294_p5 }
 0x229   : > { %p2171_p7 = por %p2170_p4, %p2169_p3 }
 0x22a   : > { %p2167_p2 = pneg %p2166_p1 }
 0x22b   : > { %p2173_p9 = por %p2172_p8, %p2171_p7 }
 0x22d   : > { %p2174_p10 = pnand %p2173_p9, %p2167_p2 }
 0x22f   : > { %2177 = shalt.err (!%p2174_p10)
}
 0x230   : > { %1941 = dma.vmem_to_hbm [thread:$0]  (%p2294_p5), %s1422_s11, 128, %s3313_s30, %s3315_s15  }
 0x260   : > { %v1147_v55 = vpop.xlane.xlu1 %1146 }
 0x261   : > { %2057 = vlog2.f32 %v1147_v55 }
 0x264   : > { %v1145_v58 = vpop.xlane.xlu0 %1144 }
 0x265   : > { %v1151_v0 = vpop.xlane.xlu1 %1150  ;;  %2059 = vlog2.f32 %v1145_v58 }
 0x266   : > { %2061 = vlog2.f32 %v1151_v0 }
 0x268   : > { %v1149_v13 = vpop.xlane.xlu0 %1148 }
 0x269   : > { %2063 = vlog2.f32 %v1149_v13 }
 0x26b   : > { %v2058_v20 = vpop.eup %2057 }
 0x26c   : > { %v1179_v36 = vmul.f32 0.6931472, %v2058_v20  ;;  %v1155_v2 = vpop.xlane.xlu1 %1154  ;;  %v1153_v22 = vpop.xlane.xlu0 %1152 }
 0x26d   : > { %2065 = vlog2.f32 %v1155_v2 }
 0x26e   : > { %v1209_v38 = vadd.f32 %v1179_v36, %v3188_v40  ;;  %2067 = vlog2.f32 %v1153_v22 }
 0x26f   : > { %v2060_v42 = vpop.eup %2059 }
 0x270   : > { %v2062_v1 = vpop.eup %2061  ;;  %v1297_v43 = vsub.f32 %v3629_v37, %v1209_v38  ;;  %v1177_v44 = vmul.f32 0.6931472, %v2060_v42  ;;  %v1159_v49 = vpop.xlane.xlu1 %1158 }
 0x271   : > { %v1157_v18 = vpop.xlane.xlu0 %1156  ;;  %v1183_v32 = vmul.f32 0.6931472, %v2062_v1  ;;  %2069 = vlog2.f32 %v1159_v49 }
 0x272   : > { %v1329_v19 = vadd.f32 %v1313_v9, %v1297_v43  ;;  %v1208_v62 = vadd.f32 %v1177_v44, %v3192_v39  ;;  %2071 = vlog2.f32 %v1157_v18 }
 0x273   : > { %v2064_v29 = vpop.eup %2063  ;;  %v1211_v40 = vadd.f32 %v1183_v32, %v3194_v48 }
 0x274   : > { %1345 = vst [vmem:[%s2835_s26 + $0x10] sm:$0xff] %v1329_v19  ;;  %v1296_v60 = vsub.f32 %v3628_v51, %v1208_v62  ;;  %v1181_v55 = vmul.f32 0.6931472, %v2064_v29  ;;  %v1163_v58 = vpop.xlane.xlu1 %1162  ;;  %v3658_v29 = vsub.f32 %v3631_v10, %v3038_v31 }
 0x275   : > { %v1161_v0 = vpop.xlane.xlu0 %1160  ;;  %v1299_v13 = vsub.f32 %v3630_v15, %v1211_v40  ;;  %2073 = vlog2.f32 %v1163_v58 }
 0x276   : > { %v1328_v37 = vadd.f32 %v1312_v12, %v1296_v60  ;;  %v1210_v9 = vadd.f32 %v1181_v55, %v3202_v34  ;;  %2075 = vlog2.f32 %v1161_v0  ;;  %v3656_v12 = vsub.f32 %v2516_v52, %v3038_v31 }
 0x277   : > { %v2066_v39 = vpop.eup %2065  ;;  %v1331_v48 = vadd.f32 %v1315_v7, %v1299_v13 }
 0x278   : > { %v2068_v20 = vpop.eup %2067  ;;  %1344 = vst [vmem:[%s2835_s26] sm:$0xff] %v1328_v37  ;;  %v1298_v36 = vsub.f32 %v2516_v52, %v1210_v9  ;;  %v1187_v2 = vmul.f32 0.6931472, %v2066_v39  ;;  %v1167_v22 = vpop.xlane.xlu1 %1166  ;;  %v3657_v52 = vsub.f32 %v3632_v57, %v3038_v31 }
 0x279   : > { %v1165_v38 = vpop.xlane.xlu0 %1164  ;;  %1347 = vst [vmem:[%s2835_s26 + $0x30] sm:$0xff] %v1331_v48  ;;  %v1185_v42 = vmul.f32 0.6931472, %v2068_v20  ;;  %2077 = vlog2.f32 %v1167_v22  ;;  %v3660_v48 = vsub.f32 %v2541_v59, %v3038_v31 }
 0x27a   : > { %v1330_v51 = vadd.f32 %v3656_v12, %v1298_v36  ;;  %v1213_v34 = vadd.f32 %v1187_v2, %v3212_v23  ;;  %2079 = vlog2.f32 %v1165_v38 }
 0x27b   : > { %v2070_v15 = vpop.eup %2069  ;;  %v1212_v7 = vadd.f32 %v1185_v42, %v3206_v33 }
 0x27c   : > { %v2072_v1 = vpop.eup %2071  ;;  %1346 = vst [vmem:[%s2835_s26 + $0x20] sm:$0xff] %v1330_v51  ;;  %v1301_v43 = vsub.f32 %v3632_v57, %v1213_v34  ;;  %v1191_v44 = vmul.f32 0.6931472, %v2070_v15  ;;  %v1171_v49 = vpop.xlane.xlu1 %1170 }
 0x27d   : > { %v1169_v18 = vpop.xlane.xlu0 %1168  ;;  %v1300_v32 = vsub.f32 %v3631_v10, %v1212_v7  ;;  %v1189_v19 = vmul.f32 0.6931472, %v2072_v1  ;;  %2081 = vlog2.f32 %v1171_v49  ;;  %v3659_v10 = vsub.f32 %v3633_v4, %v3038_v31 }
 0x27e   : > { %v1333_v23 = vadd.f32 %v3657_v52, %v1301_v43  ;;  %v1215_v62 = vadd.f32 %v1191_v44, %v3228_v25  ;;  %2083 = vlog2.f32 %v1169_v18 }
 0x27f   : > { %v2074_v33 = vpop.eup %2073  ;;  %v1332_v40 = vadd.f32 %v3658_v29, %v1300_v32  ;;  %v1214_v60 = vadd.f32 %v1189_v19, %v3217_v63 }
 0x280   : > { %v2076_v55 = vpop.eup %2075  ;;  %1349 = vst [vmem:[%s2835_s26 + $0x50] sm:$0xff] %v1333_v23  ;;  %v1303_v58 = vsub.f32 %v3633_v4, %v1215_v62  ;;  %v1195_v0 = vmul.f32 0.6931472, %v2074_v33  ;;  %v1175_v13 = vpop.xlane.xlu1 %1174 }
 0x281   : > { %v1173_v57 = vpop.xlane.xlu0 %1172  ;;  %1348 = vst [vmem:[%s2835_s26 + $0x40] sm:$0xff] %v1332_v40  ;;  %v1302_v25 = vsub.f32 %v2541_v59, %v1214_v60  ;;  %v1193_v37 = vmul.f32 0.6931472, %v2076_v55  ;;  %2085 = vlog2.f32 %v1175_v13 }
 0x282   : > { %v1335_v9 = vadd.f32 %v3659_v10, %v1303_v58  ;;  %v1217_v63 = vadd.f32 %v1195_v0, %v3243_v41  ;;  %2087 = vlog2.f32 %v1173_v57  ;;  %v3661_v41 = vsub.f32 %v3635_v61, %v3038_v31 }
 0x283   : > { %v2078_v39 = vpop.eup %2077  ;;  %v1334_v20 = vadd.f32 %v3660_v48, %v1302_v25  ;;  %v1216_v36 = vadd.f32 %v1193_v37, %v3234_v35  ;;  %v3662_v35 = vsub.f32 %v3634_v50, %v3038_v31 }
 0x284   : > { %v2080_v2 = vpop.eup %2079  ;;  %1351 = vst [vmem:[%s2835_s26 + $0x70] sm:$0xff] %v1335_v9  ;;  %v1305_v22 = vsub.f32 %v3246_v46, %v1217_v63  ;;  %v1199_v38 = vmul.f32 0.6931472, %v2078_v39 }
 0x285   : > { %1350 = vst [vmem:[%s2835_s26 + $0x60] sm:$0xff] %v1334_v20  ;;  %v1304_v4 = vsub.f32 %v3634_v50, %v1216_v36  ;;  %v1197_v42 = vmul.f32 0.6931472, %v2080_v2 }
 0x286   : > { %v1337_v12 = vadd.f32 %v3661_v41, %v1305_v22  ;;  %v1219_v59 = vadd.f32 %v1199_v38, %v3254_v16  ;;  %v3663_v16 = vsub.f32 %v3636_v53, %v3038_v31 }
 0x287   : > { %v2082_v51 = vpop.eup %2081  ;;  %v1336_v34 = vadd.f32 %v3662_v35, %v1304_v4  ;;  %v1218_v15 = vadd.f32 %v1197_v42, %v3250_v5  ;;  %v3664_v5 = vsub.f32 %v2566_v3, %v3038_v31 }
 0x288   : > { %v2084_v46 = vpop.eup %2083  ;;  %1353 = vst [vmem:[%s2835_s26 + $0x90] sm:$0xff] %v1337_v12  ;;  %v1307_v7 = vsub.f32 %v3257_v47, %v1219_v59  ;;  %v1203_v1 = vmul.f32 0.6931472, %v2082_v51 }
 0x289   : > { %1352 = vst [vmem:[%s2835_s26 + $0x80] sm:$0xff] %v1336_v34  ;;  %v1306_v61 = vsub.f32 %v2566_v3, %v1218_v15  ;;  %v1201_v43 = vmul.f32 0.6931472, %v2084_v46 }
 0x28a   : > { %v1339_v44 = vadd.f32 %v3663_v16, %v1307_v7  ;;  %v1221_v50 = vadd.f32 %v1203_v1, %v3265_v8  ;;  %v3665_v8 = vsub.f32 %v3639_v14, %v3038_v31 }
 0x28b   : > { %v2086_v49 = vpop.eup %2085  ;;  %v1338_v18 = vadd.f32 %v3664_v5, %v1306_v61  ;;  %v1220_v47 = vadd.f32 %v1201_v43, %v3261_v17 }
 0x28c   : > { %v2088_v32 = vpop.eup %2087  ;;  %1355 = vst [vmem:[%s2835_s26 + $0xb0] sm:$0xff] %v1339_v44  ;;  %v1309_v19 = vsub.f32 %v3268_v6, %v1221_v50  ;;  %v1207_v52 = vmul.f32 0.6931472, %v2086_v49 }
 0x28d   : > { %1354 = vst [vmem:[%s2835_s26 + $0xa0] sm:$0xff] %v1338_v18  ;;  %v1308_v53 = vsub.f32 %v3637_v27, %v1220_v47  ;;  %v1205_v23 = vmul.f32 0.6931472, %v2088_v32 }
 0x28e   : > { %v1341_v62 = vadd.f32 %v3665_v8, %v1309_v19  ;;  %v1223_v3 = vadd.f32 %v1207_v52, %v3280_v24 }
 0x28f   : > { %v1340_v17 = vadd.f32 %v1324_v54, %v1308_v53  ;;  %v1222_v33 = vadd.f32 %v1205_v23, %v3272_v56 }
 0x290   : > { %1357 = vst [vmem:[%s2835_s26 + $0xd0] sm:$0xff] %v1341_v62  ;;  %v1311_v6 = vsub.f32 %v3283_v28, %v1223_v3 }
 0x291   : > { %1356 = vst [vmem:[%s2835_s26 + $0xc0] sm:$0xff] %v1340_v17  ;;  %v1310_v29 = vsub.f32 %v3276_v30, %v1222_v33 }
 0x292   : > { %v1343_v40 = vadd.f32 %v1327_v26, %v1311_v6 }
 0x293   : > { %v1342_v14 = vadd.f32 %v1326_v45, %v1310_v29 }
 0x294   : > { %1359 = vst [vmem:[%s2835_s26 + $0xf0] sm:$0xff] %v1343_v40 }
 0x295   : > { %1358 = vst [vmem:[%s2835_s26 + $0xe0] sm:$0xff] %v1342_v14 }
 0x296 PF: > { %p1955_p5 = scmp.ge.s32.totalorder %s2216_s21, 2  ;;  %s1433_s28 = sand.u32 1, %s2204_s18  }
 0x297   : > { %s1434_s30 = scalar_lea.sflag [#allocation3], %s1433_s28 }
 0x298   : > { %p1946_p11 = pnand %p1955_p5, %p2298_p6 }
 0x29a   : > { %2195 = dma.done.wait (!%p1946_p11), %s1434_s30, 2048  }
 0x29b   : > { %2197 = vsyncadd (!%p1946_p11), %s1434_s30, 4294965248  ;;  %s3666_s15 = sadd.s32 4294967294, %s2216_s21  }
 0x29c   : > { %s1450_s7 = sand.u32 1, %s3666_s15  }
 0x29d   : > { %s1451_s10 = scalar_lea.sflag [#allocation5], %s1450_s7 }
 0x29e   : > { %2199 = dma.done.wait (!%p1946_p11), %s1451_s10, 256  }
 0x29f   : > { %2201 = vsyncadd (!%p1946_p11), %s1451_s10, 4294967040  ;;  %p19_p12 = scmp.ge.s32.totalorder %s2279_s24, 4   ;;  %s3667_s18 = smov %s2208_s19 }
 0x2a0   : > { %s3668_s19 = smov %s2212_s20  ;;  %s3669_s20 = smov %s2292_s27 }
 0x2a1   : > { %s3670_s21 = smov %s2279_s24  ;;  %21 = sbr.rel (!%p19_p12) target bundleno = 7 (0x7), region = 110 }
 0x2a8   :  { %1465 = vsyncpa [#allocation3], 1 }
 0x2a9   :  { %1467 = vsyncpa [#allocation3 + $0x1], 1 }
 0x2aa   :  { %1468 = vsyncpa [#allocation5], 1 }
 0x2ab   :  { %1470 = vsyncpa [#allocation5 + $0x1], 1 }

</bundles_post_ra>
